<compile_context>
chip_gen: v5e
topology: v5e:2x2
jax: 0.10.0
libtpu: 0.0.40
codegen_flags: <defaults>
</compile_context>

<pallas_src>
import functools

import jax
import jax.numpy as jnp
from jax import lax
from jax.experimental import pallas as pl
from jax.experimental.pallas import tpu as pltpu

# ----------------------------- config ---------------------------------------
VOCAB = 128
HIDDEN = 32
LAYERS = 2
HEADS = 2
HEAD_DIM = HIDDEN // HEADS
INTER = 64
MAX_POS = 16
TYPE_VOCAB = 2
LN_EPS = 1e-12

CLASS_TYPES = ("Reliability", "Privacy", "Security", "Resilience", "Safety")
NUM_CLASSES = len(CLASS_TYPES)


# --------------------------- fused Pallas kernel -----------------------------
def _bert_fused_kernel(
    ids_ref, mask_ref,
    word_ref, pos_ref, type_ref,
    emb_g_ref, emb_b_ref,
    wq_ref, bq_ref, wk_ref, bk_ref, wv_ref, bv_ref,
    wo_ref, bo_ref,
    ln1_g_ref, ln1_b_ref,
    w1_ref, b1_ref, w2_ref, b2_ref,
    ln2_g_ref, ln2_b_ref,
    pool_w_ref, pool_b_ref,
    head_w_ref, head_b_ref,
    o_ref,
    *, batch, seq,
):
    """Embeddings + encoder + pooler + all 5 regression heads in one grid step.

    All activations stay VMEM-resident.  Only HBM traffic: one read of each
    parameter slab / token-id / mask array and one (B, 5) score store.
    """
    scale = 1.0 / (HEAD_DIM ** 0.5)
    rows = batch * seq

    def layer_norm(v, g, b):
        mean = jnp.mean(v, axis=-1, keepdims=True)
        var = jnp.mean((v - mean) ** 2, axis=-1, keepdims=True)
        return (v - mean) * lax.rsqrt(var + LN_EPS) * g + b

    # ---- embeddings (fused in-kernel) ----
    # Word gather as one-hot matmul: (rows, VOCAB) @ (VOCAB, HIDDEN) on the MXU.
    ids = ids_ref[...]                                            # (rows, 1) i32
    onehot = (ids == lax.broadcasted_iota(jnp.int32, (rows, VOCAB), 1)
              ).astype(jnp.float32)
    x = jnp.dot(onehot, word_ref[...], preferred_element_type=jnp.float32)
    # Position (rows 0..seq-1 broadcast over batch) + token-type 0 embeddings.
    x3 = x.reshape(batch, seq, HIDDEN)
    x3 = x3 + pos_ref[0:seq, :][None] + type_ref[0:1, :][None]
    x = layer_norm(x3.reshape(rows, HIDDEN), emb_g_ref[...], emb_b_ref[...])

    # Additive attention mask built in-kernel from the raw 0/1 mask.
    madd = ((1.0 - mask_ref[...].astype(jnp.float32)) * -10000.0)[:, None, :]

    for l in range(LAYERS):
        # ---- multi-head self-attention ----
        # Per-head weight slabs (static ref slices) -> no lane-offset slicing,
        # no transposes, no head/batch concatenates.
        attn = jnp.zeros((rows, HIDDEN), jnp.float32)
        for h in range(HEADS):
            q = (jnp.dot(x, wq_ref[l, h], preferred_element_type=jnp.float32)
                 + bq_ref[l, h]) * scale
            k = (jnp.dot(x, wk_ref[l, h], preferred_element_type=jnp.float32)
                 + bk_ref[l, h])
            v = (jnp.dot(x, wv_ref[l, h], preferred_element_type=jnp.float32)
                 + bv_ref[l, h])
            q3 = q.reshape(batch, seq, HEAD_DIM)
            k3 = k.reshape(batch, seq, HEAD_DIM)
            v3 = v.reshape(batch, seq, HEAD_DIM)
            # Batched scores without materializing k.T.
            s = jnp.einsum('bqd,bkd->bqk', q3, k3,
                           preferred_element_type=jnp.float32) + madd
            s = s - jnp.max(s, axis=-1, keepdims=True)
            p = jnp.exp(s)
            p = p / jnp.sum(p, axis=-1, keepdims=True)      # exact softmax denom
            ctx = jnp.einsum('bqk,bkd->bqd', p, v3,
                             preferred_element_type=jnp.float32)
            # Per-head slice of the output projection; accumulate instead of
            # concatenating heads.
            attn = attn + jnp.dot(ctx.reshape(rows, HEAD_DIM), wo_ref[l, h],
                                  preferred_element_type=jnp.float32)
        attn = attn + bo_ref[l]
        x = layer_norm(attn + x, ln1_g_ref[l], ln1_b_ref[l])

        # ---- fused FFN: (rows, INTER) intermediate never touches HBM ----
        h1 = jnp.dot(x, w1_ref[l], preferred_element_type=jnp.float32) + b1_ref[l]
        # TODO(synk): HF BERT default is exact erf-GELU; tanh approximation here.
        h1 = jax.nn.gelu(h1, approximate=True)
        h2 = jnp.dot(h1, w2_ref[l], preferred_element_type=jnp.float32) + b2_ref[l]
        x = layer_norm(h2 + x, ln2_g_ref[l], ln2_b_ref[l])

    # ---- pooler on the CLS token + ALL regression heads in one matmul ----
    cls = x.reshape(batch, seq, HIDDEN)[:, 0, :]                  # (batch, H)
    pooled = jnp.tanh(
        jnp.dot(cls, pool_w_ref[...], preferred_element_type=jnp.float32)
        + pool_b_ref[...])
    scores = jnp.dot(pooled, head_w_ref[...],
                     preferred_element_type=jnp.float32) + head_b_ref[...]
    o_ref[...] = scores.astype(o_ref.dtype)                       # (batch, 5)


def _full_spec(shape):
    zeros = (0,) * len(shape)
    return pl.BlockSpec(shape, lambda i, _z=zeros: _z)


# --------------------------- parameter setup ---------------------------------
def init_params(key):
    def nrm(k, shape):
        return jax.random.normal(k, shape, dtype=jnp.float32) * 0.02

    keys = iter(jax.random.split(key, 256))
    p = {
        "word_emb": nrm(next(keys), (VOCAB, HIDDEN)),
        "pos_emb": nrm(next(keys), (MAX_POS, HIDDEN)),
        "type_emb": nrm(next(keys), (TYPE_VOCAB, HIDDEN)),
        "emb_ln_g": jnp.ones((1, HIDDEN), jnp.float32),
        "emb_ln_b": jnp.zeros((1, HIDDEN), jnp.float32),
        "pool_w": nrm(next(keys), (HIDDEN, HIDDEN)),
        "pool_b": jnp.zeros((1, HIDDEN), jnp.float32),
    }

    layers = []
    for _ in range(LAYERS):
        layers.append({
            "wq": nrm(next(keys), (HIDDEN, HIDDEN)), "bq": jnp.zeros((HIDDEN,), jnp.float32),
            "wk": nrm(next(keys), (HIDDEN, HIDDEN)), "bk": jnp.zeros((HIDDEN,), jnp.float32),
            "wv": nrm(next(keys), (HIDDEN, HIDDEN)), "bv": jnp.zeros((HIDDEN,), jnp.float32),
            "wo": nrm(next(keys), (HIDDEN, HIDDEN)), "bo": jnp.zeros((HIDDEN,), jnp.float32),
            "ln1_g": jnp.ones((HIDDEN,), jnp.float32), "ln1_b": jnp.zeros((HIDDEN,), jnp.float32),
            "w1": nrm(next(keys), (HIDDEN, INTER)), "b1": jnp.zeros((INTER,), jnp.float32),
            "w2": nrm(next(keys), (INTER, HIDDEN)), "b2": jnp.zeros((HIDDEN,), jnp.float32),
            "ln2_g": jnp.ones((HIDDEN,), jnp.float32), "ln2_b": jnp.zeros((HIDDEN,), jnp.float32),
        })

    # --- pack per-layer weights into per-head slabs for the fused kernel ---
    def cols_per_head(w):   # (H, H) -> (HEADS, H, D): head h uses cols h*D:(h+1)*D
        return w.reshape(HIDDEN, HEADS, HEAD_DIM).transpose(1, 0, 2)

    def bias_per_head(b):   # (H,) -> (HEADS, 1, D)
        return b.reshape(HEADS, 1, HEAD_DIM)

    def rows_per_head(w):   # (H, H) -> (HEADS, D, H): head h uses rows h*D:(h+1)*D
        return w.reshape(HEADS, HEAD_DIM, HIDDEN)

    p["packed"] = {
        "wq": jnp.stack([cols_per_head(l["wq"]) for l in layers]),   # (L,HD,H,D)
        "bq": jnp.stack([bias_per_head(l["bq"]) for l in layers]),   # (L,HD,1,D)
        "wk": jnp.stack([cols_per_head(l["wk"]) for l in layers]),
        "bk": jnp.stack([bias_per_head(l["bk"]) for l in layers]),
        "wv": jnp.stack([cols_per_head(l["wv"]) for l in layers]),
        "bv": jnp.stack([bias_per_head(l["bv"]) for l in layers]),
        "wo": jnp.stack([rows_per_head(l["wo"]) for l in layers]),   # (L,HD,D,H)
        "bo": jnp.stack([l["bo"][None, :] for l in layers]),         # (L,1,H)
        "ln1_g": jnp.stack([l["ln1_g"][None, :] for l in layers]),
        "ln1_b": jnp.stack([l["ln1_b"][None, :] for l in layers]),
        "w1": jnp.stack([l["w1"] for l in layers]),                  # (L,H,I)
        "b1": jnp.stack([l["b1"][None, :] for l in layers]),         # (L,1,I)
        "w2": jnp.stack([l["w2"] for l in layers]),                  # (L,I,H)
        "b2": jnp.stack([l["b2"][None, :] for l in layers]),
        "ln2_g": jnp.stack([l["ln2_g"][None, :] for l in layers]),
        "ln2_b": jnp.stack([l["ln2_b"][None, :] for l in layers]),
    }

    # All 5 class-specific regression heads in one (HIDDEN, 5) slab.
    head_ws = [nrm(next(keys), (HIDDEN, 1)) for _ in CLASS_TYPES]
    p["head_w"] = jnp.concatenate(head_ws, axis=1)                   # (H, 5)
    p["head_b"] = jnp.zeros((1, NUM_CLASSES), jnp.float32)           # (1, 5)
    return p


# ----------------------------- forward pass ----------------------------------
@jax.jit
def _forward(params, input_ids, attention_mask, class_idx):
    B, S = input_ids.shape
    pk = params["packed"]

    ids_col = input_ids.reshape(B * S, 1).astype(jnp.int32)
    mask = attention_mask.astype(jnp.int32)

    args = (
        ids_col, mask,
        params["word_emb"], params["pos_emb"], params["type_emb"],
        params["emb_ln_g"], params["emb_ln_b"],
        pk["wq"], pk["bq"], pk["wk"], pk["bk"], pk["wv"], pk["bv"],
        pk["wo"], pk["bo"],
        pk["ln1_g"], pk["ln1_b"],
        pk["w1"], pk["b1"], pk["w2"], pk["b2"],
        pk["ln2_g"], pk["ln2_b"],
        params["pool_w"], params["pool_b"],
        params["head_w"], params["head_b"],
    )

    kernel = functools.partial(_bert_fused_kernel, batch=B, seq=S)
    scores = pl.pallas_call(
        kernel,
        out_shape=jax.ShapeDtypeStruct((B, NUM_CLASSES), jnp.float32),
        grid=(1,),
        in_specs=[_full_spec(a.shape) for a in args],
        out_specs=_full_spec((B, NUM_CLASSES)),
        compiler_params=pltpu.CompilerParams(
            dimension_semantics=("arbitrary",)),
    )(*args)

    # Traced class index -> single compilation shared by all 5 class_types.
    return lax.dynamic_slice_in_dim(scores, class_idx, 1, axis=1)


def bert_for_quantification(params, input_ids, attention_mask, class_type):
    if class_type not in CLASS_TYPES:
        raise ValueError(
            "Invalid class_type. Must be one of: " + ", ".join(CLASS_TYPES))
    return _forward(params, input_ids, attention_mask,
                    CLASS_TYPES.index(class_type))


# --------------------------------- main ---------------------------------------
if __name__ == "__main__":
    key = jax.random.PRNGKey(0)
    pkey, ikey = jax.random.split(key)

    params = init_params(pkey)

    B, S = 2, 8
    input_ids = jax.random.randint(ikey, (B, S), 0, VOCAB, dtype=jnp.int32)
    attention_mask = jnp.array(
        [[1, 1, 1, 1, 1, 1, 1, 1],
         [1, 1, 1, 1, 1, 0, 0, 0]], dtype=jnp.int32)

    score = bert_for_quantification(params, input_ids, attention_mask, "Privacy")
    score = jax.block_until_ready(score)
    assert score.shape == (B, 1) and score.dtype == jnp.float32
    assert bool(jnp.all(jnp.isfinite(score)))
    print("KERNEL_OK")
</pallas_src>

<mosaic_0001>
module attributes {stable_mosaic.version = 11 : i64} {
  func.func @_bert_fused_kernel(%arg0: i32, %arg1: memref<16x1xi32, #tpu.memory_space<vmem>>, %arg2: memref<2x8xi32, #tpu.memory_space<vmem>>, %arg3: memref<128x32xf32, #tpu.memory_space<vmem>>, %arg4: memref<16x32xf32, #tpu.memory_space<vmem>>, %arg5: memref<2x32xf32, #tpu.memory_space<vmem>>, %arg6: memref<1x32xf32, #tpu.memory_space<vmem>>, %arg7: memref<1x32xf32, #tpu.memory_space<vmem>>, %arg8: memref<2x2x32x16xf32, #tpu.memory_space<vmem>>, %arg9: memref<2x2x1x16xf32, #tpu.memory_space<vmem>>, %arg10: memref<2x2x32x16xf32, #tpu.memory_space<vmem>>, %arg11: memref<2x2x1x16xf32, #tpu.memory_space<vmem>>, %arg12: memref<2x2x32x16xf32, #tpu.memory_space<vmem>>, %arg13: memref<2x2x1x16xf32, #tpu.memory_space<vmem>>, %arg14: memref<2x2x16x32xf32, #tpu.memory_space<vmem>>, %arg15: memref<2x1x32xf32, #tpu.memory_space<vmem>>, %arg16: memref<2x1x32xf32, #tpu.memory_space<vmem>>, %arg17: memref<2x1x32xf32, #tpu.memory_space<vmem>>, %arg18: memref<2x32x64xf32, #tpu.memory_space<vmem>>, %arg19: memref<2x1x64xf32, #tpu.memory_space<vmem>>, %arg20: memref<2x64x32xf32, #tpu.memory_space<vmem>>, %arg21: memref<2x1x32xf32, #tpu.memory_space<vmem>>, %arg22: memref<2x1x32xf32, #tpu.memory_space<vmem>>, %arg23: memref<2x1x32xf32, #tpu.memory_space<vmem>>, %arg24: memref<32x32xf32, #tpu.memory_space<vmem>>, %arg25: memref<1x32xf32, #tpu.memory_space<vmem>>, %arg26: memref<32x5xf32, #tpu.memory_space<vmem>>, %arg27: memref<1x5xf32, #tpu.memory_space<vmem>>, %arg28: memref<2x5xf32, #tpu.memory_space<vmem>>) attributes {dimension_semantics = [#tpu.dimension_semantics<arbitrary>], iteration_bounds = array<i64: 1>, scalar_prefetch = 0 : i64, scratch_operands = 0 : i64, tpu.core_type = #tpu.core_type<tc>, window_params = [{pipeline_mode = #tpu.pipeline_mode<synchronous>, transform_indices = @transform_0, window_bounds = array<i64: 16, 1>}, {pipeline_mode = #tpu.pipeline_mode<synchronous>, transform_indices = @transform_1, window_bounds = array<i64: 2, 8>}, {pipeline_mode = #tpu.pipeline_mode<synchronous>, transform_indices = @transform_2, window_bounds = array<i64: 128, 32>}, {pipeline_mode = #tpu.pipeline_mode<synchronous>, transform_indices = @transform_3, window_bounds = array<i64: 16, 32>}, {pipeline_mode = #tpu.pipeline_mode<synchronous>, transform_indices = @transform_4, window_bounds = array<i64: 2, 32>}, {pipeline_mode = #tpu.pipeline_mode<synchronous>, transform_indices = @transform_5, window_bounds = array<i64: 1, 32>}, {pipeline_mode = #tpu.pipeline_mode<synchronous>, transform_indices = @transform_6, window_bounds = array<i64: 1, 32>}, {pipeline_mode = #tpu.pipeline_mode<synchronous>, transform_indices = @transform_7, window_bounds = array<i64: 2, 2, 32, 16>}, {pipeline_mode = #tpu.pipeline_mode<synchronous>, transform_indices = @transform_8, window_bounds = array<i64: 2, 2, 1, 16>}, {pipeline_mode = #tpu.pipeline_mode<synchronous>, transform_indices = @transform_9, window_bounds = array<i64: 2, 2, 32, 16>}, {pipeline_mode = #tpu.pipeline_mode<synchronous>, transform_indices = @transform_10, window_bounds = array<i64: 2, 2, 1, 16>}, {pipeline_mode = #tpu.pipeline_mode<synchronous>, transform_indices = @transform_11, window_bounds = array<i64: 2, 2, 32, 16>}, {pipeline_mode = #tpu.pipeline_mode<synchronous>, transform_indices = @transform_12, window_bounds = array<i64: 2, 2, 1, 16>}, {pipeline_mode = #tpu.pipeline_mode<synchronous>, transform_indices = @transform_13, window_bounds = array<i64: 2, 2, 16, 32>}, {pipeline_mode = #tpu.pipeline_mode<synchronous>, transform_indices = @transform_14, window_bounds = array<i64: 2, 1, 32>}, {pipeline_mode = #tpu.pipeline_mode<synchronous>, transform_indices = @transform_15, window_bounds = array<i64: 2, 1, 32>}, {pipeline_mode = #tpu.pipeline_mode<synchronous>, transform_indices = @transform_16, window_bounds = array<i64: 2, 1, 32>}, {pipeline_mode = #tpu.pipeline_mode<synchronous>, transform_indices = @transform_17, window_bounds = array<i64: 2, 32, 64>}, {pipeline_mode = #tpu.pipeline_mode<synchronous>, transform_indices = @transform_18, window_bounds = array<i64: 2, 1, 64>}, {pipeline_mode = #tpu.pipeline_mode<synchronous>, transform_indices = @transform_19, window_bounds = array<i64: 2, 64, 32>}, {pipeline_mode = #tpu.pipeline_mode<synchronous>, transform_indices = @transform_20, window_bounds = array<i64: 2, 1, 32>}, {pipeline_mode = #tpu.pipeline_mode<synchronous>, transform_indices = @transform_21, window_bounds = array<i64: 2, 1, 32>}, {pipeline_mode = #tpu.pipeline_mode<synchronous>, transform_indices = @transform_22, window_bounds = array<i64: 2, 1, 32>}, {pipeline_mode = #tpu.pipeline_mode<synchronous>, transform_indices = @transform_23, window_bounds = array<i64: 32, 32>}, {pipeline_mode = #tpu.pipeline_mode<synchronous>, transform_indices = @transform_24, window_bounds = array<i64: 1, 32>}, {pipeline_mode = #tpu.pipeline_mode<synchronous>, transform_indices = @transform_25, window_bounds = array<i64: 32, 5>}, {pipeline_mode = #tpu.pipeline_mode<synchronous>, transform_indices = @transform_26, window_bounds = array<i64: 1, 5>}, {pipeline_mode = #tpu.pipeline_mode<synchronous>, transform_indices = @transform_27, window_bounds = array<i64: 2, 5>}]} {
    %c0 = arith.constant 0 : index
    %c0_0 = arith.constant 0 : index
    %0 = vector.load %arg1[%c0, %c0_0] : memref<16x1xi32, #tpu.memory_space<vmem>>, vector<16x1xi32>
    %1 = tpu.iota {dimensions = array<i32: 1>} : vector<16x128xi32>
    %2 = vector.broadcast %0 : vector<16x1xi32> to vector<16x128xi32>
    %3 = arith.cmpi eq, %2, %1 : vector<16x128xi32>
    %4 = arith.extui %3 : vector<16x128xi1> to vector<16x128xi32>
    %5 = arith.sitofp %4 : vector<16x128xi32> to vector<16x128xf32>
    %c0_1 = arith.constant 0 : index
    %c0_2 = arith.constant 0 : index
    %6 = vector.load %arg3[%c0_1, %c0_2] : memref<128x32xf32, #tpu.memory_space<vmem>>, vector<128x32xf32>
    %cst = arith.constant dense<0.000000e+00> : vector<16x32xf32>
    %7 = tpu.matmul %5, %6, %cst {dimension_numbers = #tpu.dot_dimension_numbers<[1], [0], [0], [1], [0, 0, 1, 1], [], []>} : vector<16x128xf32>, vector<128x32xf32>, vector<16x32xf32> -> vector<16x32xf32>
    %8 = vector.shape_cast %7 : vector<16x32xf32> to vector<2x8x32xf32>
    %c0_3 = arith.constant 0 : index
    %c0_4 = arith.constant 0 : index
    %9 = vector.load %arg4[%c0_3, %c0_4] : memref<16x32xf32, #tpu.memory_space<vmem>>, vector<8x32xf32>
    %10 = vector.shape_cast %9 : vector<8x32xf32> to vector<1x8x32xf32>
    %11 = vector.broadcast %10 : vector<1x8x32xf32> to vector<2x8x32xf32>
    %12 = arith.addf %8, %11 : vector<2x8x32xf32>
    %c0_5 = arith.constant 0 : index
    %c0_6 = arith.constant 0 : index
    %13 = vector.load %arg5[%c0_5, %c0_6] : memref<2x32xf32, #tpu.memory_space<vmem>>, vector<1x32xf32>
    %14 = vector.shape_cast %13 : vector<1x32xf32> to vector<1x1x32xf32>
    %15 = vector.broadcast %14 : vector<1x1x32xf32> to vector<2x8x32xf32>
    %16 = arith.addf %12, %15 : vector<2x8x32xf32>
    %17 = vector.shape_cast %16 : vector<2x8x32xf32> to vector<16x32xf32>
    %c0_7 = arith.constant 0 : index
    %c0_8 = arith.constant 0 : index
    %18 = vector.load %arg6[%c0_7, %c0_8] : memref<1x32xf32, #tpu.memory_space<vmem>>, vector<1x32xf32>
    %c0_9 = arith.constant 0 : index
    %c0_10 = arith.constant 0 : index
    %19 = vector.load %arg7[%c0_9, %c0_10] : memref<1x32xf32, #tpu.memory_space<vmem>>, vector<1x32xf32>
    %cst_11 = arith.constant dense<0.000000e+00> : vector<16xf32>
    %20 = vector.multi_reduction <add>, %17, %cst_11 [1] : vector<16x32xf32> to vector<16xf32>
    %21 = vector.shape_cast %20 : vector<16xf32> to vector<16x1xf32>
    %cst_12 = arith.constant 3.200000e+01 : f32
    %22 = vector.broadcast %cst_12 : f32 to vector<16x1xf32>
    %23 = arith.divf %21, %22 : vector<16x1xf32>
    %24 = vector.broadcast %23 : vector<16x1xf32> to vector<16x32xf32>
    %25 = arith.subf %17, %24 : vector<16x32xf32>
    %26 = arith.mulf %25, %25 : vector<16x32xf32>
    %cst_13 = arith.constant dense<0.000000e+00> : vector<16xf32>
    %27 = vector.multi_reduction <add>, %26, %cst_13 [1] : vector<16x32xf32> to vector<16xf32>
    %28 = vector.shape_cast %27 : vector<16xf32> to vector<16x1xf32>
    %cst_14 = arith.constant 3.200000e+01 : f32
    %29 = vector.broadcast %cst_14 : f32 to vector<16x1xf32>
    %30 = arith.divf %28, %29 : vector<16x1xf32>
    %31 = vector.broadcast %23 : vector<16x1xf32> to vector<16x32xf32>
    %32 = arith.subf %17, %31 : vector<16x32xf32>
    %cst_15 = arith.constant 9.99999996E-13 : f32
    %33 = vector.broadcast %cst_15 : f32 to vector<16x1xf32>
    %34 = arith.addf %30, %33 : vector<16x1xf32>
    %35 = math.rsqrt %34 : vector<16x1xf32>
    %36 = vector.broadcast %35 : vector<16x1xf32> to vector<16x32xf32>
    %37 = arith.mulf %32, %36 : vector<16x32xf32>
    %38 = vector.broadcast %18 : vector<1x32xf32> to vector<16x32xf32>
    %39 = arith.mulf %37, %38 : vector<16x32xf32>
    %40 = vector.broadcast %19 : vector<1x32xf32> to vector<16x32xf32>
    %41 = arith.addf %39, %40 : vector<16x32xf32>
    %c0_16 = arith.constant 0 : index
    %c0_17 = arith.constant 0 : index
    %42 = vector.load %arg2[%c0_16, %c0_17] : memref<2x8xi32, #tpu.memory_space<vmem>>, vector<2x8xi32>
    %43 = arith.sitofp %42 : vector<2x8xi32> to vector<2x8xf32>
    %cst_18 = arith.constant 1.000000e+00 : f32
    %44 = vector.broadcast %cst_18 : f32 to vector<2x8xf32>
    %45 = arith.subf %44, %43 : vector<2x8xf32>
    %cst_19 = arith.constant -1.000000e+04 : f32
    %46 = vector.broadcast %cst_19 : f32 to vector<2x8xf32>
    %47 = arith.mulf %45, %46 : vector<2x8xf32>
    %48 = vector.shape_cast %47 : vector<2x8xf32> to vector<2x1x8xf32>
    %cst_20 = arith.constant 0.000000e+00 : f32
    %49 = vector.broadcast %cst_20 : f32 to vector<16x32xf32>
    %c0_21 = arith.constant 0 : index
    %c0_22 = arith.constant 0 : index
    %c0_23 = arith.constant 0 : index
    %c0_24 = arith.constant 0 : index
    %50 = vector.load %arg8[%c0_21, %c0_22, %c0_23, %c0_24] : memref<2x2x32x16xf32, #tpu.memory_space<vmem>>, vector<1x1x32x16xf32>
    %51 = vector.shape_cast %50 : vector<1x1x32x16xf32> to vector<32x16xf32>
    %cst_25 = arith.constant dense<0.000000e+00> : vector<16x16xf32>
    %52 = tpu.matmul %41, %51, %cst_25 {dimension_numbers = #tpu.dot_dimension_numbers<[1], [0], [0], [1], [0, 0, 1, 1], [], []>} : vector<16x32xf32>, vector<32x16xf32>, vector<16x16xf32> -> vector<16x16xf32>
    %c0_26 = arith.constant 0 : index
    %c0_27 = arith.constant 0 : index
    %c0_28 = arith.constant 0 : index
    %c0_29 = arith.constant 0 : index
    %53 = vector.load %arg9[%c0_26, %c0_27, %c0_28, %c0_29] : memref<2x2x1x16xf32, #tpu.memory_space<vmem>>, vector<1x1x1x16xf32>
    %54 = vector.shape_cast %53 : vector<1x1x1x16xf32> to vector<1x16xf32>
    %55 = vector.broadcast %54 : vector<1x16xf32> to vector<16x16xf32>
    %56 = arith.addf %52, %55 : vector<16x16xf32>
    %cst_30 = arith.constant 2.500000e-01 : f32
    %57 = vector.broadcast %cst_30 : f32 to vector<16x16xf32>
    %58 = arith.mulf %56, %57 : vector<16x16xf32>
    %c0_31 = arith.constant 0 : index
    %c0_32 = arith.constant 0 : index
    %c0_33 = arith.constant 0 : index
    %c0_34 = arith.constant 0 : index
    %59 = vector.load %arg10[%c0_31, %c0_32, %c0_33, %c0_34] : memref<2x2x32x16xf32, #tpu.memory_space<vmem>>, vector<1x1x32x16xf32>
    %60 = vector.shape_cast %59 : vector<1x1x32x16xf32> to vector<32x16xf32>
    %cst_35 = arith.constant dense<0.000000e+00> : vector<16x16xf32>
    %61 = tpu.matmul %41, %60, %cst_35 {dimension_numbers = #tpu.dot_dimension_numbers<[1], [0], [0], [1], [0, 0, 1, 1], [], []>} : vector<16x32xf32>, vector<32x16xf32>, vector<16x16xf32> -> vector<16x16xf32>
    %c0_36 = arith.constant 0 : index
    %c0_37 = arith.constant 0 : index
    %c0_38 = arith.constant 0 : index
    %c0_39 = arith.constant 0 : index
    %62 = vector.load %arg11[%c0_36, %c0_37, %c0_38, %c0_39] : memref<2x2x1x16xf32, #tpu.memory_space<vmem>>, vector<1x1x1x16xf32>
    %63 = vector.shape_cast %62 : vector<1x1x1x16xf32> to vector<1x16xf32>
    %64 = vector.broadcast %63 : vector<1x16xf32> to vector<16x16xf32>
    %65 = arith.addf %61, %64 : vector<16x16xf32>
    %c0_40 = arith.constant 0 : index
    %c0_41 = arith.constant 0 : index
    %c0_42 = arith.constant 0 : index
    %c0_43 = arith.constant 0 : index
    %66 = vector.load %arg12[%c0_40, %c0_41, %c0_42, %c0_43] : memref<2x2x32x16xf32, #tpu.memory_space<vmem>>, vector<1x1x32x16xf32>
    %67 = vector.shape_cast %66 : vector<1x1x32x16xf32> to vector<32x16xf32>
    %cst_44 = arith.constant dense<0.000000e+00> : vector<16x16xf32>
    %68 = tpu.matmul %41, %67, %cst_44 {dimension_numbers = #tpu.dot_dimension_numbers<[1], [0], [0], [1], [0, 0, 1, 1], [], []>} : vector<16x32xf32>, vector<32x16xf32>, vector<16x16xf32> -> vector<16x16xf32>
    %c0_45 = arith.constant 0 : index
    %c0_46 = arith.constant 0 : index
    %c0_47 = arith.constant 0 : index
    %c0_48 = arith.constant 0 : index
    %69 = vector.load %arg13[%c0_45, %c0_46, %c0_47, %c0_48] : memref<2x2x1x16xf32, #tpu.memory_space<vmem>>, vector<1x1x1x16xf32>
    %70 = vector.shape_cast %69 : vector<1x1x1x16xf32> to vector<1x16xf32>
    %71 = vector.broadcast %70 : vector<1x16xf32> to vector<16x16xf32>
    %72 = arith.addf %68, %71 : vector<16x16xf32>
    %73 = vector.shape_cast %58 : vector<16x16xf32> to vector<2x8x16xf32>
    %74 = vector.shape_cast %65 : vector<16x16xf32> to vector<2x8x16xf32>
    %75 = vector.shape_cast %72 : vector<16x16xf32> to vector<2x8x16xf32>
    "tpu.trace_start"() <{level = 10 : i32, message = "bqd,bkd->bqk"}> : () -> ()
    %cst_49 = arith.constant dense<0.000000e+00> : vector<2x8x8xf32>
    %76 = tpu.matmul %73, %74, %cst_49 {dimension_numbers = #tpu.dot_dimension_numbers<[2], [2], [1], [1], [0, 0, 0, 1, 1, 1], [0], [0]>} : vector<2x8x16xf32>, vector<2x8x16xf32>, vector<2x8x8xf32> -> vector<2x8x8xf32>
    "tpu.trace_stop"() : () -> ()
    %77 = vector.broadcast %48 : vector<2x1x8xf32> to vector<2x8x8xf32>
    %78 = arith.addf %76, %77 : vector<2x8x8xf32>
    %cst_50 = arith.constant dense<0xFF800000> : vector<2x8xf32>
    %79 = vector.multi_reduction <maximumf>, %78, %cst_50 [2] : vector<2x8x8xf32> to vector<2x8xf32>
    %80 = vector.shape_cast %79 : vector<2x8xf32> to vector<2x8x1xf32>
    %81 = vector.broadcast %80 : vector<2x8x1xf32> to vector<2x8x8xf32>
    %82 = arith.subf %78, %81 : vector<2x8x8xf32>
    %83 = math.exp %82 : vector<2x8x8xf32>
    %cst_51 = arith.constant dense<0.000000e+00> : vector<2x8xf32>
    %84 = vector.multi_reduction <add>, %83, %cst_51 [2] : vector<2x8x8xf32> to vector<2x8xf32>
    %85 = vector.shape_cast %84 : vector<2x8xf32> to vector<2x8x1xf32>
    %86 = vector.broadcast %85 : vector<2x8x1xf32> to vector<2x8x8xf32>
    %87 = arith.divf %83, %86 : vector<2x8x8xf32>
    "tpu.trace_start"() <{level = 10 : i32, message = "bqk,bkd->bqd"}> : () -> ()
    %cst_52 = arith.constant dense<0.000000e+00> : vector<2x8x16xf32>
    %88 = tpu.matmul %87, %75, %cst_52 {dimension_numbers = #tpu.dot_dimension_numbers<[2], [1], [1], [2], [0, 0, 0, 1, 1, 2], [0], [0]>} : vector<2x8x8xf32>, vector<2x8x16xf32>, vector<2x8x16xf32> -> vector<2x8x16xf32>
    "tpu.trace_stop"() : () -> ()
    %89 = vector.shape_cast %88 : vector<2x8x16xf32> to vector<16x16xf32>
    %c0_53 = arith.constant 0 : index
    %c0_54 = arith.constant 0 : index
    %c0_55 = arith.constant 0 : index
    %c0_56 = arith.constant 0 : index
    %90 = vector.load %arg14[%c0_53, %c0_54, %c0_55, %c0_56] : memref<2x2x16x32xf32, #tpu.memory_space<vmem>>, vector<1x1x16x32xf32>
    %91 = vector.shape_cast %90 : vector<1x1x16x32xf32> to vector<16x32xf32>
    %cst_57 = arith.constant dense<0.000000e+00> : vector<16x32xf32>
    %92 = tpu.matmul %89, %91, %cst_57 {dimension_numbers = #tpu.dot_dimension_numbers<[1], [0], [0], [1], [0, 0, 1, 1], [], []>} : vector<16x16xf32>, vector<16x32xf32>, vector<16x32xf32> -> vector<16x32xf32>
    %93 = arith.addf %49, %92 : vector<16x32xf32>
    %c0_58 = arith.constant 0 : index
    %c1 = arith.constant 1 : index
    %c0_59 = arith.constant 0 : index
    %c0_60 = arith.constant 0 : index
    %94 = vector.load %arg8[%c0_58, %c1, %c0_59, %c0_60] : memref<2x2x32x16xf32, #tpu.memory_space<vmem>>, vector<1x1x32x16xf32>
    %95 = vector.shape_cast %94 : vector<1x1x32x16xf32> to vector<32x16xf32>
    %cst_61 = arith.constant dense<0.000000e+00> : vector<16x16xf32>
    %96 = tpu.matmul %41, %95, %cst_61 {dimension_numbers = #tpu.dot_dimension_numbers<[1], [0], [0], [1], [0, 0, 1, 1], [], []>} : vector<16x32xf32>, vector<32x16xf32>, vector<16x16xf32> -> vector<16x16xf32>
    %c0_62 = arith.constant 0 : index
    %c1_63 = arith.constant 1 : index
    %c0_64 = arith.constant 0 : index
    %c0_65 = arith.constant 0 : index
    %97 = vector.load %arg9[%c0_62, %c1_63, %c0_64, %c0_65] : memref<2x2x1x16xf32, #tpu.memory_space<vmem>>, vector<1x1x1x16xf32>
    %98 = vector.shape_cast %97 : vector<1x1x1x16xf32> to vector<1x16xf32>
    %99 = vector.broadcast %98 : vector<1x16xf32> to vector<16x16xf32>
    %100 = arith.addf %96, %99 : vector<16x16xf32>
    %cst_66 = arith.constant 2.500000e-01 : f32
    %101 = vector.broadcast %cst_66 : f32 to vector<16x16xf32>
    %102 = arith.mulf %100, %101 : vector<16x16xf32>
    %c0_67 = arith.constant 0 : index
    %c1_68 = arith.constant 1 : index
    %c0_69 = arith.constant 0 : index
    %c0_70 = arith.constant 0 : index
    %103 = vector.load %arg10[%c0_67, %c1_68, %c0_69, %c0_70] : memref<2x2x32x16xf32, #tpu.memory_space<vmem>>, vector<1x1x32x16xf32>
    %104 = vector.shape_cast %103 : vector<1x1x32x16xf32> to vector<32x16xf32>
    %cst_71 = arith.constant dense<0.000000e+00> : vector<16x16xf32>
    %105 = tpu.matmul %41, %104, %cst_71 {dimension_numbers = #tpu.dot_dimension_numbers<[1], [0], [0], [1], [0, 0, 1, 1], [], []>} : vector<16x32xf32>, vector<32x16xf32>, vector<16x16xf32> -> vector<16x16xf32>
    %c0_72 = arith.constant 0 : index
    %c1_73 = arith.constant 1 : index
    %c0_74 = arith.constant 0 : index
    %c0_75 = arith.constant 0 : index
    %106 = vector.load %arg11[%c0_72, %c1_73, %c0_74, %c0_75] : memref<2x2x1x16xf32, #tpu.memory_space<vmem>>, vector<1x1x1x16xf32>
    %107 = vector.shape_cast %106 : vector<1x1x1x16xf32> to vector<1x16xf32>
    %108 = vector.broadcast %107 : vector<1x16xf32> to vector<16x16xf32>
    %109 = arith.addf %105, %108 : vector<16x16xf32>
    %c0_76 = arith.constant 0 : index
    %c1_77 = arith.constant 1 : index
    %c0_78 = arith.constant 0 : index
    %c0_79 = arith.constant 0 : index
    %110 = vector.load %arg12[%c0_76, %c1_77, %c0_78, %c0_79] : memref<2x2x32x16xf32, #tpu.memory_space<vmem>>, vector<1x1x32x16xf32>
    %111 = vector.shape_cast %110 : vector<1x1x32x16xf32> to vector<32x16xf32>
    %cst_80 = arith.constant dense<0.000000e+00> : vector<16x16xf32>
    %112 = tpu.matmul %41, %111, %cst_80 {dimension_numbers = #tpu.dot_dimension_numbers<[1], [0], [0], [1], [0, 0, 1, 1], [], []>} : vector<16x32xf32>, vector<32x16xf32>, vector<16x16xf32> -> vector<16x16xf32>
    %c0_81 = arith.constant 0 : index
    %c1_82 = arith.constant 1 : index
    %c0_83 = arith.constant 0 : index
    %c0_84 = arith.constant 0 : index
    %113 = vector.load %arg13[%c0_81, %c1_82, %c0_83, %c0_84] : memref<2x2x1x16xf32, #tpu.memory_space<vmem>>, vector<1x1x1x16xf32>
    %114 = vector.shape_cast %113 : vector<1x1x1x16xf32> to vector<1x16xf32>
    %115 = vector.broadcast %114 : vector<1x16xf32> to vector<16x16xf32>
    %116 = arith.addf %112, %115 : vector<16x16xf32>
    %117 = vector.shape_cast %102 : vector<16x16xf32> to vector<2x8x16xf32>
    %118 = vector.shape_cast %109 : vector<16x16xf32> to vector<2x8x16xf32>
    %119 = vector.shape_cast %116 : vector<16x16xf32> to vector<2x8x16xf32>
    "tpu.trace_start"() <{level = 10 : i32, message = "bqd,bkd->bqk"}> : () -> ()
    %cst_85 = arith.constant dense<0.000000e+00> : vector<2x8x8xf32>
    %120 = tpu.matmul %117, %118, %cst_85 {dimension_numbers = #tpu.dot_dimension_numbers<[2], [2], [1], [1], [0, 0, 0, 1, 1, 1], [0], [0]>} : vector<2x8x16xf32>, vector<2x8x16xf32>, vector<2x8x8xf32> -> vector<2x8x8xf32>
    "tpu.trace_stop"() : () -> ()
    %121 = vector.broadcast %48 : vector<2x1x8xf32> to vector<2x8x8xf32>
    %122 = arith.addf %120, %121 : vector<2x8x8xf32>
    %cst_86 = arith.constant dense<0xFF800000> : vector<2x8xf32>
    %123 = vector.multi_reduction <maximumf>, %122, %cst_86 [2] : vector<2x8x8xf32> to vector<2x8xf32>
    %124 = vector.shape_cast %123 : vector<2x8xf32> to vector<2x8x1xf32>
    %125 = vector.broadcast %124 : vector<2x8x1xf32> to vector<2x8x8xf32>
    %126 = arith.subf %122, %125 : vector<2x8x8xf32>
    %127 = math.exp %126 : vector<2x8x8xf32>
    %cst_87 = arith.constant dense<0.000000e+00> : vector<2x8xf32>
    %128 = vector.multi_reduction <add>, %127, %cst_87 [2] : vector<2x8x8xf32> to vector<2x8xf32>
    %129 = vector.shape_cast %128 : vector<2x8xf32> to vector<2x8x1xf32>
    %130 = vector.broadcast %129 : vector<2x8x1xf32> to vector<2x8x8xf32>
    %131 = arith.divf %127, %130 : vector<2x8x8xf32>
    "tpu.trace_start"() <{level = 10 : i32, message = "bqk,bkd->bqd"}> : () -> ()
    %cst_88 = arith.constant dense<0.000000e+00> : vector<2x8x16xf32>
    %132 = tpu.matmul %131, %119, %cst_88 {dimension_numbers = #tpu.dot_dimension_numbers<[2], [1], [1], [2], [0, 0, 0, 1, 1, 2], [0], [0]>} : vector<2x8x8xf32>, vector<2x8x16xf32>, vector<2x8x16xf32> -> vector<2x8x16xf32>
    "tpu.trace_stop"() : () -> ()
    %133 = vector.shape_cast %132 : vector<2x8x16xf32> to vector<16x16xf32>
    %c0_89 = arith.constant 0 : index
    %c1_90 = arith.constant 1 : index
    %c0_91 = arith.constant 0 : index
    %c0_92 = arith.constant 0 : index
    %134 = vector.load %arg14[%c0_89, %c1_90, %c0_91, %c0_92] : memref<2x2x16x32xf32, #tpu.memory_space<vmem>>, vector<1x1x16x32xf32>
    %135 = vector.shape_cast %134 : vector<1x1x16x32xf32> to vector<16x32xf32>
    %cst_93 = arith.constant dense<0.000000e+00> : vector<16x32xf32>
    %136 = tpu.matmul %133, %135, %cst_93 {dimension_numbers = #tpu.dot_dimension_numbers<[1], [0], [0], [1], [0, 0, 1, 1], [], []>} : vector<16x16xf32>, vector<16x32xf32>, vector<16x32xf32> -> vector<16x32xf32>
    %137 = arith.addf %93, %136 : vector<16x32xf32>
    %c0_94 = arith.constant 0 : index
    %c0_95 = arith.constant 0 : index
    %c0_96 = arith.constant 0 : index
    %138 = vector.load %arg15[%c0_94, %c0_95, %c0_96] : memref<2x1x32xf32, #tpu.memory_space<vmem>>, vector<1x1x32xf32>
    %139 = vector.shape_cast %138 : vector<1x1x32xf32> to vector<1x32xf32>
    %140 = vector.broadcast %139 : vector<1x32xf32> to vector<16x32xf32>
    %141 = arith.addf %137, %140 : vector<16x32xf32>
    %142 = arith.addf %141, %41 : vector<16x32xf32>
    %c0_97 = arith.constant 0 : index
    %c0_98 = arith.constant 0 : index
    %c0_99 = arith.constant 0 : index
    %143 = vector.load %arg16[%c0_97, %c0_98, %c0_99] : memref<2x1x32xf32, #tpu.memory_space<vmem>>, vector<1x1x32xf32>
    %144 = vector.shape_cast %143 : vector<1x1x32xf32> to vector<1x32xf32>
    %c0_100 = arith.constant 0 : index
    %c0_101 = arith.constant 0 : index
    %c0_102 = arith.constant 0 : index
    %145 = vector.load %arg17[%c0_100, %c0_101, %c0_102] : memref<2x1x32xf32, #tpu.memory_space<vmem>>, vector<1x1x32xf32>
    %146 = vector.shape_cast %145 : vector<1x1x32xf32> to vector<1x32xf32>
    %cst_103 = arith.constant dense<0.000000e+00> : vector<16xf32>
    %147 = vector.multi_reduction <add>, %142, %cst_103 [1] : vector<16x32xf32> to vector<16xf32>
    %148 = vector.shape_cast %147 : vector<16xf32> to vector<16x1xf32>
    %cst_104 = arith.constant 3.200000e+01 : f32
    %149 = vector.broadcast %cst_104 : f32 to vector<16x1xf32>
    %150 = arith.divf %148, %149 : vector<16x1xf32>
    %151 = vector.broadcast %150 : vector<16x1xf32> to vector<16x32xf32>
    %152 = arith.subf %142, %151 : vector<16x32xf32>
    %153 = arith.mulf %152, %152 : vector<16x32xf32>
    %cst_105 = arith.constant dense<0.000000e+00> : vector<16xf32>
    %154 = vector.multi_reduction <add>, %153, %cst_105 [1] : vector<16x32xf32> to vector<16xf32>
    %155 = vector.shape_cast %154 : vector<16xf32> to vector<16x1xf32>
    %cst_106 = arith.constant 3.200000e+01 : f32
    %156 = vector.broadcast %cst_106 : f32 to vector<16x1xf32>
    %157 = arith.divf %155, %156 : vector<16x1xf32>
    %158 = vector.broadcast %150 : vector<16x1xf32> to vector<16x32xf32>
    %159 = arith.subf %142, %158 : vector<16x32xf32>
    %cst_107 = arith.constant 9.99999996E-13 : f32
    %160 = vector.broadcast %cst_107 : f32 to vector<16x1xf32>
    %161 = arith.addf %157, %160 : vector<16x1xf32>
    %162 = math.rsqrt %161 : vector<16x1xf32>
    %163 = vector.broadcast %162 : vector<16x1xf32> to vector<16x32xf32>
    %164 = arith.mulf %159, %163 : vector<16x32xf32>
    %165 = vector.broadcast %144 : vector<1x32xf32> to vector<16x32xf32>
    %166 = arith.mulf %164, %165 : vector<16x32xf32>
    %167 = vector.broadcast %146 : vector<1x32xf32> to vector<16x32xf32>
    %168 = arith.addf %166, %167 : vector<16x32xf32>
    %c0_108 = arith.constant 0 : index
    %c0_109 = arith.constant 0 : index
    %c0_110 = arith.constant 0 : index
    %169 = vector.load %arg18[%c0_108, %c0_109, %c0_110] : memref<2x32x64xf32, #tpu.memory_space<vmem>>, vector<1x32x64xf32>
    %170 = vector.shape_cast %169 : vector<1x32x64xf32> to vector<32x64xf32>
    %cst_111 = arith.constant dense<0.000000e+00> : vector<16x64xf32>
    %171 = tpu.matmul %168, %170, %cst_111 {dimension_numbers = #tpu.dot_dimension_numbers<[1], [0], [0], [1], [0, 0, 1, 1], [], []>} : vector<16x32xf32>, vector<32x64xf32>, vector<16x64xf32> -> vector<16x64xf32>
    %c0_112 = arith.constant 0 : index
    %c0_113 = arith.constant 0 : index
    %c0_114 = arith.constant 0 : index
    %172 = vector.load %arg19[%c0_112, %c0_113, %c0_114] : memref<2x1x64xf32, #tpu.memory_space<vmem>>, vector<1x1x64xf32>
    %173 = vector.shape_cast %172 : vector<1x1x64xf32> to vector<1x64xf32>
    %174 = vector.broadcast %173 : vector<1x64xf32> to vector<16x64xf32>
    %175 = arith.addf %171, %174 : vector<16x64xf32>
    %176 = arith.mulf %175, %175 : vector<16x64xf32>
    %177 = arith.mulf %175, %176 : vector<16x64xf32>
    %cst_115 = arith.constant 4.471500e-02 : f32
    %178 = vector.broadcast %cst_115 : f32 to vector<16x64xf32>
    %179 = arith.mulf %178, %177 : vector<16x64xf32>
    %180 = arith.addf %175, %179 : vector<16x64xf32>
    %cst_116 = arith.constant 0.797884583 : f32
    %181 = vector.broadcast %cst_116 : f32 to vector<16x64xf32>
    %182 = arith.mulf %181, %180 : vector<16x64xf32>
    %183 = math.tanh %182 : vector<16x64xf32>
    %cst_117 = arith.constant 1.000000e+00 : f32
    %184 = vector.broadcast %cst_117 : f32 to vector<16x64xf32>
    %185 = arith.addf %184, %183 : vector<16x64xf32>
    %cst_118 = arith.constant 5.000000e-01 : f32
    %186 = vector.broadcast %cst_118 : f32 to vector<16x64xf32>
    %187 = arith.mulf %186, %185 : vector<16x64xf32>
    %188 = arith.mulf %175, %187 : vector<16x64xf32>
    %c0_119 = arith.constant 0 : index
    %c0_120 = arith.constant 0 : index
    %c0_121 = arith.constant 0 : index
    %189 = vector.load %arg20[%c0_119, %c0_120, %c0_121] : memref<2x64x32xf32, #tpu.memory_space<vmem>>, vector<1x64x32xf32>
    %190 = vector.shape_cast %189 : vector<1x64x32xf32> to vector<64x32xf32>
    %cst_122 = arith.constant dense<0.000000e+00> : vector<16x32xf32>
    %191 = tpu.matmul %188, %190, %cst_122 {dimension_numbers = #tpu.dot_dimension_numbers<[1], [0], [0], [1], [0, 0, 1, 1], [], []>} : vector<16x64xf32>, vector<64x32xf32>, vector<16x32xf32> -> vector<16x32xf32>
    %c0_123 = arith.constant 0 : index
    %c0_124 = arith.constant 0 : index
    %c0_125 = arith.constant 0 : index
    %192 = vector.load %arg21[%c0_123, %c0_124, %c0_125] : memref<2x1x32xf32, #tpu.memory_space<vmem>>, vector<1x1x32xf32>
    %193 = vector.shape_cast %192 : vector<1x1x32xf32> to vector<1x32xf32>
    %194 = vector.broadcast %193 : vector<1x32xf32> to vector<16x32xf32>
    %195 = arith.addf %191, %194 : vector<16x32xf32>
    %196 = arith.addf %195, %168 : vector<16x32xf32>
    %c0_126 = arith.constant 0 : index
    %c0_127 = arith.constant 0 : index
    %c0_128 = arith.constant 0 : index
    %197 = vector.load %arg22[%c0_126, %c0_127, %c0_128] : memref<2x1x32xf32, #tpu.memory_space<vmem>>, vector<1x1x32xf32>
    %198 = vector.shape_cast %197 : vector<1x1x32xf32> to vector<1x32xf32>
    %c0_129 = arith.constant 0 : index
    %c0_130 = arith.constant 0 : index
    %c0_131 = arith.constant 0 : index
    %199 = vector.load %arg23[%c0_129, %c0_130, %c0_131] : memref<2x1x32xf32, #tpu.memory_space<vmem>>, vector<1x1x32xf32>
    %200 = vector.shape_cast %199 : vector<1x1x32xf32> to vector<1x32xf32>
    %cst_132 = arith.constant dense<0.000000e+00> : vector<16xf32>
    %201 = vector.multi_reduction <add>, %196, %cst_132 [1] : vector<16x32xf32> to vector<16xf32>
    %202 = vector.shape_cast %201 : vector<16xf32> to vector<16x1xf32>
    %cst_133 = arith.constant 3.200000e+01 : f32
    %203 = vector.broadcast %cst_133 : f32 to vector<16x1xf32>
    %204 = arith.divf %202, %203 : vector<16x1xf32>
    %205 = vector.broadcast %204 : vector<16x1xf32> to vector<16x32xf32>
    %206 = arith.subf %196, %205 : vector<16x32xf32>
    %207 = arith.mulf %206, %206 : vector<16x32xf32>
    %cst_134 = arith.constant dense<0.000000e+00> : vector<16xf32>
    %208 = vector.multi_reduction <add>, %207, %cst_134 [1] : vector<16x32xf32> to vector<16xf32>
    %209 = vector.shape_cast %208 : vector<16xf32> to vector<16x1xf32>
    %cst_135 = arith.constant 3.200000e+01 : f32
    %210 = vector.broadcast %cst_135 : f32 to vector<16x1xf32>
    %211 = arith.divf %209, %210 : vector<16x1xf32>
    %212 = vector.broadcast %204 : vector<16x1xf32> to vector<16x32xf32>
    %213 = arith.subf %196, %212 : vector<16x32xf32>
    %cst_136 = arith.constant 9.99999996E-13 : f32
    %214 = vector.broadcast %cst_136 : f32 to vector<16x1xf32>
    %215 = arith.addf %211, %214 : vector<16x1xf32>
    %216 = math.rsqrt %215 : vector<16x1xf32>
    %217 = vector.broadcast %216 : vector<16x1xf32> to vector<16x32xf32>
    %218 = arith.mulf %213, %217 : vector<16x32xf32>
    %219 = vector.broadcast %198 : vector<1x32xf32> to vector<16x32xf32>
    %220 = arith.mulf %218, %219 : vector<16x32xf32>
    %221 = vector.broadcast %200 : vector<1x32xf32> to vector<16x32xf32>
    %222 = arith.addf %220, %221 : vector<16x32xf32>
    %cst_137 = arith.constant 0.000000e+00 : f32
    %223 = vector.broadcast %cst_137 : f32 to vector<16x32xf32>
    %c1_138 = arith.constant 1 : index
    %c0_139 = arith.constant 0 : index
    %c0_140 = arith.constant 0 : index
    %c0_141 = arith.constant 0 : index
    %224 = vector.load %arg8[%c1_138, %c0_139, %c0_140, %c0_141] : memref<2x2x32x16xf32, #tpu.memory_space<vmem>>, vector<1x1x32x16xf32>
    %225 = vector.shape_cast %224 : vector<1x1x32x16xf32> to vector<32x16xf32>
    %cst_142 = arith.constant dense<0.000000e+00> : vector<16x16xf32>
    %226 = tpu.matmul %222, %225, %cst_142 {dimension_numbers = #tpu.dot_dimension_numbers<[1], [0], [0], [1], [0, 0, 1, 1], [], []>} : vector<16x32xf32>, vector<32x16xf32>, vector<16x16xf32> -> vector<16x16xf32>
    %c1_143 = arith.constant 1 : index
    %c0_144 = arith.constant 0 : index
    %c0_145 = arith.constant 0 : index
    %c0_146 = arith.constant 0 : index
    %227 = vector.load %arg9[%c1_143, %c0_144, %c0_145, %c0_146] : memref<2x2x1x16xf32, #tpu.memory_space<vmem>>, vector<1x1x1x16xf32>
    %228 = vector.shape_cast %227 : vector<1x1x1x16xf32> to vector<1x16xf32>
    %229 = vector.broadcast %228 : vector<1x16xf32> to vector<16x16xf32>
    %230 = arith.addf %226, %229 : vector<16x16xf32>
    %cst_147 = arith.constant 2.500000e-01 : f32
    %231 = vector.broadcast %cst_147 : f32 to vector<16x16xf32>
    %232 = arith.mulf %230, %231 : vector<16x16xf32>
    %c1_148 = arith.constant 1 : index
    %c0_149 = arith.constant 0 : index
    %c0_150 = arith.constant 0 : index
    %c0_151 = arith.constant 0 : index
    %233 = vector.load %arg10[%c1_148, %c0_149, %c0_150, %c0_151] : memref<2x2x32x16xf32, #tpu.memory_space<vmem>>, vector<1x1x32x16xf32>
    %234 = vector.shape_cast %233 : vector<1x1x32x16xf32> to vector<32x16xf32>
    %cst_152 = arith.constant dense<0.000000e+00> : vector<16x16xf32>
    %235 = tpu.matmul %222, %234, %cst_152 {dimension_numbers = #tpu.dot_dimension_numbers<[1], [0], [0], [1], [0, 0, 1, 1], [], []>} : vector<16x32xf32>, vector<32x16xf32>, vector<16x16xf32> -> vector<16x16xf32>
    %c1_153 = arith.constant 1 : index
    %c0_154 = arith.constant 0 : index
    %c0_155 = arith.constant 0 : index
    %c0_156 = arith.constant 0 : index
    %236 = vector.load %arg11[%c1_153, %c0_154, %c0_155, %c0_156] : memref<2x2x1x16xf32, #tpu.memory_space<vmem>>, vector<1x1x1x16xf32>
    %237 = vector.shape_cast %236 : vector<1x1x1x16xf32> to vector<1x16xf32>
    %238 = vector.broadcast %237 : vector<1x16xf32> to vector<16x16xf32>
    %239 = arith.addf %235, %238 : vector<16x16xf32>
    %c1_157 = arith.constant 1 : index
    %c0_158 = arith.constant 0 : index
    %c0_159 = arith.constant 0 : index
    %c0_160 = arith.constant 0 : index
    %240 = vector.load %arg12[%c1_157, %c0_158, %c0_159, %c0_160] : memref<2x2x32x16xf32, #tpu.memory_space<vmem>>, vector<1x1x32x16xf32>
    %241 = vector.shape_cast %240 : vector<1x1x32x16xf32> to vector<32x16xf32>
    %cst_161 = arith.constant dense<0.000000e+00> : vector<16x16xf32>
    %242 = tpu.matmul %222, %241, %cst_161 {dimension_numbers = #tpu.dot_dimension_numbers<[1], [0], [0], [1], [0, 0, 1, 1], [], []>} : vector<16x32xf32>, vector<32x16xf32>, vector<16x16xf32> -> vector<16x16xf32>
    %c1_162 = arith.constant 1 : index
    %c0_163 = arith.constant 0 : index
    %c0_164 = arith.constant 0 : index
    %c0_165 = arith.constant 0 : index
    %243 = vector.load %arg13[%c1_162, %c0_163, %c0_164, %c0_165] : memref<2x2x1x16xf32, #tpu.memory_space<vmem>>, vector<1x1x1x16xf32>
    %244 = vector.shape_cast %243 : vector<1x1x1x16xf32> to vector<1x16xf32>
    %245 = vector.broadcast %244 : vector<1x16xf32> to vector<16x16xf32>
    %246 = arith.addf %242, %245 : vector<16x16xf32>
    %247 = vector.shape_cast %232 : vector<16x16xf32> to vector<2x8x16xf32>
    %248 = vector.shape_cast %239 : vector<16x16xf32> to vector<2x8x16xf32>
    %249 = vector.shape_cast %246 : vector<16x16xf32> to vector<2x8x16xf32>
    "tpu.trace_start"() <{level = 10 : i32, message = "bqd,bkd->bqk"}> : () -> ()
    %cst_166 = arith.constant dense<0.000000e+00> : vector<2x8x8xf32>
    %250 = tpu.matmul %247, %248, %cst_166 {dimension_numbers = #tpu.dot_dimension_numbers<[2], [2], [1], [1], [0, 0, 0, 1, 1, 1], [0], [0]>} : vector<2x8x16xf32>, vector<2x8x16xf32>, vector<2x8x8xf32> -> vector<2x8x8xf32>
    "tpu.trace_stop"() : () -> ()
    %251 = vector.broadcast %48 : vector<2x1x8xf32> to vector<2x8x8xf32>
    %252 = arith.addf %250, %251 : vector<2x8x8xf32>
    %cst_167 = arith.constant dense<0xFF800000> : vector<2x8xf32>
    %253 = vector.multi_reduction <maximumf>, %252, %cst_167 [2] : vector<2x8x8xf32> to vector<2x8xf32>
    %254 = vector.shape_cast %253 : vector<2x8xf32> to vector<2x8x1xf32>
    %255 = vector.broadcast %254 : vector<2x8x1xf32> to vector<2x8x8xf32>
    %256 = arith.subf %252, %255 : vector<2x8x8xf32>
    %257 = math.exp %256 : vector<2x8x8xf32>
    %cst_168 = arith.constant dense<0.000000e+00> : vector<2x8xf32>
    %258 = vector.multi_reduction <add>, %257, %cst_168 [2] : vector<2x8x8xf32> to vector<2x8xf32>
    %259 = vector.shape_cast %258 : vector<2x8xf32> to vector<2x8x1xf32>
    %260 = vector.broadcast %259 : vector<2x8x1xf32> to vector<2x8x8xf32>
    %261 = arith.divf %257, %260 : vector<2x8x8xf32>
    "tpu.trace_start"() <{level = 10 : i32, message = "bqk,bkd->bqd"}> : () -> ()
    %cst_169 = arith.constant dense<0.000000e+00> : vector<2x8x16xf32>
    %262 = tpu.matmul %261, %249, %cst_169 {dimension_numbers = #tpu.dot_dimension_numbers<[2], [1], [1], [2], [0, 0, 0, 1, 1, 2], [0], [0]>} : vector<2x8x8xf32>, vector<2x8x16xf32>, vector<2x8x16xf32> -> vector<2x8x16xf32>
    "tpu.trace_stop"() : () -> ()
    %263 = vector.shape_cast %262 : vector<2x8x16xf32> to vector<16x16xf32>
    %c1_170 = arith.constant 1 : index
    %c0_171 = arith.constant 0 : index
    %c0_172 = arith.constant 0 : index
    %c0_173 = arith.constant 0 : index
    %264 = vector.load %arg14[%c1_170, %c0_171, %c0_172, %c0_173] : memref<2x2x16x32xf32, #tpu.memory_space<vmem>>, vector<1x1x16x32xf32>
    %265 = vector.shape_cast %264 : vector<1x1x16x32xf32> to vector<16x32xf32>
    %cst_174 = arith.constant dense<0.000000e+00> : vector<16x32xf32>
    %266 = tpu.matmul %263, %265, %cst_174 {dimension_numbers = #tpu.dot_dimension_numbers<[1], [0], [0], [1], [0, 0, 1, 1], [], []>} : vector<16x16xf32>, vector<16x32xf32>, vector<16x32xf32> -> vector<16x32xf32>
    %267 = arith.addf %223, %266 : vector<16x32xf32>
    %c1_175 = arith.constant 1 : index
    %c1_176 = arith.constant 1 : index
    %c0_177 = arith.constant 0 : index
    %c0_178 = arith.constant 0 : index
    %268 = vector.load %arg8[%c1_175, %c1_176, %c0_177, %c0_178] : memref<2x2x32x16xf32, #tpu.memory_space<vmem>>, vector<1x1x32x16xf32>
    %269 = vector.shape_cast %268 : vector<1x1x32x16xf32> to vector<32x16xf32>
    %cst_179 = arith.constant dense<0.000000e+00> : vector<16x16xf32>
    %270 = tpu.matmul %222, %269, %cst_179 {dimension_numbers = #tpu.dot_dimension_numbers<[1], [0], [0], [1], [0, 0, 1, 1], [], []>} : vector<16x32xf32>, vector<32x16xf32>, vector<16x16xf32> -> vector<16x16xf32>
    %c1_180 = arith.constant 1 : index
    %c1_181 = arith.constant 1 : index
    %c0_182 = arith.constant 0 : index
    %c0_183 = arith.constant 0 : index
    %271 = vector.load %arg9[%c1_180, %c1_181, %c0_182, %c0_183] : memref<2x2x1x16xf32, #tpu.memory_space<vmem>>, vector<1x1x1x16xf32>
    %272 = vector.shape_cast %271 : vector<1x1x1x16xf32> to vector<1x16xf32>
    %273 = vector.broadcast %272 : vector<1x16xf32> to vector<16x16xf32>
    %274 = arith.addf %270, %273 : vector<16x16xf32>
    %cst_184 = arith.constant 2.500000e-01 : f32
    %275 = vector.broadcast %cst_184 : f32 to vector<16x16xf32>
    %276 = arith.mulf %274, %275 : vector<16x16xf32>
    %c1_185 = arith.constant 1 : index
    %c1_186 = arith.constant 1 : index
    %c0_187 = arith.constant 0 : index
    %c0_188 = arith.constant 0 : index
    %277 = vector.load %arg10[%c1_185, %c1_186, %c0_187, %c0_188] : memref<2x2x32x16xf32, #tpu.memory_space<vmem>>, vector<1x1x32x16xf32>
    %278 = vector.shape_cast %277 : vector<1x1x32x16xf32> to vector<32x16xf32>
    %cst_189 = arith.constant dense<0.000000e+00> : vector<16x16xf32>
    %279 = tpu.matmul %222, %278, %cst_189 {dimension_numbers = #tpu.dot_dimension_numbers<[1], [0], [0], [1], [0, 0, 1, 1], [], []>} : vector<16x32xf32>, vector<32x16xf32>, vector<16x16xf32> -> vector<16x16xf32>
    %c1_190 = arith.constant 1 : index
    %c1_191 = arith.constant 1 : index
    %c0_192 = arith.constant 0 : index
    %c0_193 = arith.constant 0 : index
    %280 = vector.load %arg11[%c1_190, %c1_191, %c0_192, %c0_193] : memref<2x2x1x16xf32, #tpu.memory_space<vmem>>, vector<1x1x1x16xf32>
    %281 = vector.shape_cast %280 : vector<1x1x1x16xf32> to vector<1x16xf32>
    %282 = vector.broadcast %281 : vector<1x16xf32> to vector<16x16xf32>
    %283 = arith.addf %279, %282 : vector<16x16xf32>
    %c1_194 = arith.constant 1 : index
    %c1_195 = arith.constant 1 : index
    %c0_196 = arith.constant 0 : index
    %c0_197 = arith.constant 0 : index
    %284 = vector.load %arg12[%c1_194, %c1_195, %c0_196, %c0_197] : memref<2x2x32x16xf32, #tpu.memory_space<vmem>>, vector<1x1x32x16xf32>
    %285 = vector.shape_cast %284 : vector<1x1x32x16xf32> to vector<32x16xf32>
    %cst_198 = arith.constant dense<0.000000e+00> : vector<16x16xf32>
    %286 = tpu.matmul %222, %285, %cst_198 {dimension_numbers = #tpu.dot_dimension_numbers<[1], [0], [0], [1], [0, 0, 1, 1], [], []>} : vector<16x32xf32>, vector<32x16xf32>, vector<16x16xf32> -> vector<16x16xf32>
    %c1_199 = arith.constant 1 : index
    %c1_200 = arith.constant 1 : index
    %c0_201 = arith.constant 0 : index
    %c0_202 = arith.constant 0 : index
    %287 = vector.load %arg13[%c1_199, %c1_200, %c0_201, %c0_202] : memref<2x2x1x16xf32, #tpu.memory_space<vmem>>, vector<1x1x1x16xf32>
    %288 = vector.shape_cast %287 : vector<1x1x1x16xf32> to vector<1x16xf32>
    %289 = vector.broadcast %288 : vector<1x16xf32> to vector<16x16xf32>
    %290 = arith.addf %286, %289 : vector<16x16xf32>
    %291 = vector.shape_cast %276 : vector<16x16xf32> to vector<2x8x16xf32>
    %292 = vector.shape_cast %283 : vector<16x16xf32> to vector<2x8x16xf32>
    %293 = vector.shape_cast %290 : vector<16x16xf32> to vector<2x8x16xf32>
    "tpu.trace_start"() <{level = 10 : i32, message = "bqd,bkd->bqk"}> : () -> ()
    %cst_203 = arith.constant dense<0.000000e+00> : vector<2x8x8xf32>
    %294 = tpu.matmul %291, %292, %cst_203 {dimension_numbers = #tpu.dot_dimension_numbers<[2], [2], [1], [1], [0, 0, 0, 1, 1, 1], [0], [0]>} : vector<2x8x16xf32>, vector<2x8x16xf32>, vector<2x8x8xf32> -> vector<2x8x8xf32>
    "tpu.trace_stop"() : () -> ()
    %295 = vector.broadcast %48 : vector<2x1x8xf32> to vector<2x8x8xf32>
    %296 = arith.addf %294, %295 : vector<2x8x8xf32>
    %cst_204 = arith.constant dense<0xFF800000> : vector<2x8xf32>
    %297 = vector.multi_reduction <maximumf>, %296, %cst_204 [2] : vector<2x8x8xf32> to vector<2x8xf32>
    %298 = vector.shape_cast %297 : vector<2x8xf32> to vector<2x8x1xf32>
    %299 = vector.broadcast %298 : vector<2x8x1xf32> to vector<2x8x8xf32>
    %300 = arith.subf %296, %299 : vector<2x8x8xf32>
    %301 = math.exp %300 : vector<2x8x8xf32>
    %cst_205 = arith.constant dense<0.000000e+00> : vector<2x8xf32>
    %302 = vector.multi_reduction <add>, %301, %cst_205 [2] : vector<2x8x8xf32> to vector<2x8xf32>
    %303 = vector.shape_cast %302 : vector<2x8xf32> to vector<2x8x1xf32>
    %304 = vector.broadcast %303 : vector<2x8x1xf32> to vector<2x8x8xf32>
    %305 = arith.divf %301, %304 : vector<2x8x8xf32>
    "tpu.trace_start"() <{level = 10 : i32, message = "bqk,bkd->bqd"}> : () -> ()
    %cst_206 = arith.constant dense<0.000000e+00> : vector<2x8x16xf32>
    %306 = tpu.matmul %305, %293, %cst_206 {dimension_numbers = #tpu.dot_dimension_numbers<[2], [1], [1], [2], [0, 0, 0, 1, 1, 2], [0], [0]>} : vector<2x8x8xf32>, vector<2x8x16xf32>, vector<2x8x16xf32> -> vector<2x8x16xf32>
    "tpu.trace_stop"() : () -> ()
    %307 = vector.shape_cast %306 : vector<2x8x16xf32> to vector<16x16xf32>
    %c1_207 = arith.constant 1 : index
    %c1_208 = arith.constant 1 : index
    %c0_209 = arith.constant 0 : index
    %c0_210 = arith.constant 0 : index
    %308 = vector.load %arg14[%c1_207, %c1_208, %c0_209, %c0_210] : memref<2x2x16x32xf32, #tpu.memory_space<vmem>>, vector<1x1x16x32xf32>
    %309 = vector.shape_cast %308 : vector<1x1x16x32xf32> to vector<16x32xf32>
    %cst_211 = arith.constant dense<0.000000e+00> : vector<16x32xf32>
    %310 = tpu.matmul %307, %309, %cst_211 {dimension_numbers = #tpu.dot_dimension_numbers<[1], [0], [0], [1], [0, 0, 1, 1], [], []>} : vector<16x16xf32>, vector<16x32xf32>, vector<16x32xf32> -> vector<16x32xf32>
    %311 = arith.addf %267, %310 : vector<16x32xf32>
    %c1_212 = arith.constant 1 : index
    %c0_213 = arith.constant 0 : index
    %c0_214 = arith.constant 0 : index
    %312 = vector.load %arg15[%c1_212, %c0_213, %c0_214] : memref<2x1x32xf32, #tpu.memory_space<vmem>>, vector<1x1x32xf32>
    %313 = vector.shape_cast %312 : vector<1x1x32xf32> to vector<1x32xf32>
    %314 = vector.broadcast %313 : vector<1x32xf32> to vector<16x32xf32>
    %315 = arith.addf %311, %314 : vector<16x32xf32>
    %316 = arith.addf %315, %222 : vector<16x32xf32>
    %c1_215 = arith.constant 1 : index
    %c0_216 = arith.constant 0 : index
    %c0_217 = arith.constant 0 : index
    %317 = vector.load %arg16[%c1_215, %c0_216, %c0_217] : memref<2x1x32xf32, #tpu.memory_space<vmem>>, vector<1x1x32xf32>
    %318 = vector.shape_cast %317 : vector<1x1x32xf32> to vector<1x32xf32>
    %c1_218 = arith.constant 1 : index
    %c0_219 = arith.constant 0 : index
    %c0_220 = arith.constant 0 : index
    %319 = vector.load %arg17[%c1_218, %c0_219, %c0_220] : memref<2x1x32xf32, #tpu.memory_space<vmem>>, vector<1x1x32xf32>
    %320 = vector.shape_cast %319 : vector<1x1x32xf32> to vector<1x32xf32>
    %cst_221 = arith.constant dense<0.000000e+00> : vector<16xf32>
    %321 = vector.multi_reduction <add>, %316, %cst_221 [1] : vector<16x32xf32> to vector<16xf32>
    %322 = vector.shape_cast %321 : vector<16xf32> to vector<16x1xf32>
    %cst_222 = arith.constant 3.200000e+01 : f32
    %323 = vector.broadcast %cst_222 : f32 to vector<16x1xf32>
    %324 = arith.divf %322, %323 : vector<16x1xf32>
    %325 = vector.broadcast %324 : vector<16x1xf32> to vector<16x32xf32>
    %326 = arith.subf %316, %325 : vector<16x32xf32>
    %327 = arith.mulf %326, %326 : vector<16x32xf32>
    %cst_223 = arith.constant dense<0.000000e+00> : vector<16xf32>
    %328 = vector.multi_reduction <add>, %327, %cst_223 [1] : vector<16x32xf32> to vector<16xf32>
    %329 = vector.shape_cast %328 : vector<16xf32> to vector<16x1xf32>
    %cst_224 = arith.constant 3.200000e+01 : f32
    %330 = vector.broadcast %cst_224 : f32 to vector<16x1xf32>
    %331 = arith.divf %329, %330 : vector<16x1xf32>
    %332 = vector.broadcast %324 : vector<16x1xf32> to vector<16x32xf32>
    %333 = arith.subf %316, %332 : vector<16x32xf32>
    %cst_225 = arith.constant 9.99999996E-13 : f32
    %334 = vector.broadcast %cst_225 : f32 to vector<16x1xf32>
    %335 = arith.addf %331, %334 : vector<16x1xf32>
    %336 = math.rsqrt %335 : vector<16x1xf32>
    %337 = vector.broadcast %336 : vector<16x1xf32> to vector<16x32xf32>
    %338 = arith.mulf %333, %337 : vector<16x32xf32>
    %339 = vector.broadcast %318 : vector<1x32xf32> to vector<16x32xf32>
    %340 = arith.mulf %338, %339 : vector<16x32xf32>
    %341 = vector.broadcast %320 : vector<1x32xf32> to vector<16x32xf32>
    %342 = arith.addf %340, %341 : vector<16x32xf32>
    %c1_226 = arith.constant 1 : index
    %c0_227 = arith.constant 0 : index
    %c0_228 = arith.constant 0 : index
    %343 = vector.load %arg18[%c1_226, %c0_227, %c0_228] : memref<2x32x64xf32, #tpu.memory_space<vmem>>, vector<1x32x64xf32>
    %344 = vector.shape_cast %343 : vector<1x32x64xf32> to vector<32x64xf32>
    %cst_229 = arith.constant dense<0.000000e+00> : vector<16x64xf32>
    %345 = tpu.matmul %342, %344, %cst_229 {dimension_numbers = #tpu.dot_dimension_numbers<[1], [0], [0], [1], [0, 0, 1, 1], [], []>} : vector<16x32xf32>, vector<32x64xf32>, vector<16x64xf32> -> vector<16x64xf32>
    %c1_230 = arith.constant 1 : index
    %c0_231 = arith.constant 0 : index
    %c0_232 = arith.constant 0 : index
    %346 = vector.load %arg19[%c1_230, %c0_231, %c0_232] : memref<2x1x64xf32, #tpu.memory_space<vmem>>, vector<1x1x64xf32>
    %347 = vector.shape_cast %346 : vector<1x1x64xf32> to vector<1x64xf32>
    %348 = vector.broadcast %347 : vector<1x64xf32> to vector<16x64xf32>
    %349 = arith.addf %345, %348 : vector<16x64xf32>
    %350 = arith.mulf %349, %349 : vector<16x64xf32>
    %351 = arith.mulf %349, %350 : vector<16x64xf32>
    %cst_233 = arith.constant 4.471500e-02 : f32
    %352 = vector.broadcast %cst_233 : f32 to vector<16x64xf32>
    %353 = arith.mulf %352, %351 : vector<16x64xf32>
    %354 = arith.addf %349, %353 : vector<16x64xf32>
    %cst_234 = arith.constant 0.797884583 : f32
    %355 = vector.broadcast %cst_234 : f32 to vector<16x64xf32>
    %356 = arith.mulf %355, %354 : vector<16x64xf32>
    %357 = math.tanh %356 : vector<16x64xf32>
    %cst_235 = arith.constant 1.000000e+00 : f32
    %358 = vector.broadcast %cst_235 : f32 to vector<16x64xf32>
    %359 = arith.addf %358, %357 : vector<16x64xf32>
    %cst_236 = arith.constant 5.000000e-01 : f32
    %360 = vector.broadcast %cst_236 : f32 to vector<16x64xf32>
    %361 = arith.mulf %360, %359 : vector<16x64xf32>
    %362 = arith.mulf %349, %361 : vector<16x64xf32>
    %c1_237 = arith.constant 1 : index
    %c0_238 = arith.constant 0 : index
    %c0_239 = arith.constant 0 : index
    %363 = vector.load %arg20[%c1_237, %c0_238, %c0_239] : memref<2x64x32xf32, #tpu.memory_space<vmem>>, vector<1x64x32xf32>
    %364 = vector.shape_cast %363 : vector<1x64x32xf32> to vector<64x32xf32>
    %cst_240 = arith.constant dense<0.000000e+00> : vector<16x32xf32>
    %365 = tpu.matmul %362, %364, %cst_240 {dimension_numbers = #tpu.dot_dimension_numbers<[1], [0], [0], [1], [0, 0, 1, 1], [], []>} : vector<16x64xf32>, vector<64x32xf32>, vector<16x32xf32> -> vector<16x32xf32>
    %c1_241 = arith.constant 1 : index
    %c0_242 = arith.constant 0 : index
    %c0_243 = arith.constant 0 : index
    %366 = vector.load %arg21[%c1_241, %c0_242, %c0_243] : memref<2x1x32xf32, #tpu.memory_space<vmem>>, vector<1x1x32xf32>
    %367 = vector.shape_cast %366 : vector<1x1x32xf32> to vector<1x32xf32>
    %368 = vector.broadcast %367 : vector<1x32xf32> to vector<16x32xf32>
    %369 = arith.addf %365, %368 : vector<16x32xf32>
    %370 = arith.addf %369, %342 : vector<16x32xf32>
    %c1_244 = arith.constant 1 : index
    %c0_245 = arith.constant 0 : index
    %c0_246 = arith.constant 0 : index
    %371 = vector.load %arg22[%c1_244, %c0_245, %c0_246] : memref<2x1x32xf32, #tpu.memory_space<vmem>>, vector<1x1x32xf32>
    %372 = vector.shape_cast %371 : vector<1x1x32xf32> to vector<1x32xf32>
    %c1_247 = arith.constant 1 : index
    %c0_248 = arith.constant 0 : index
    %c0_249 = arith.constant 0 : index
    %373 = vector.load %arg23[%c1_247, %c0_248, %c0_249] : memref<2x1x32xf32, #tpu.memory_space<vmem>>, vector<1x1x32xf32>
    %374 = vector.shape_cast %373 : vector<1x1x32xf32> to vector<1x32xf32>
    %cst_250 = arith.constant dense<0.000000e+00> : vector<16xf32>
    %375 = vector.multi_reduction <add>, %370, %cst_250 [1] : vector<16x32xf32> to vector<16xf32>
    %376 = vector.shape_cast %375 : vector<16xf32> to vector<16x1xf32>
    %cst_251 = arith.constant 3.200000e+01 : f32
    %377 = vector.broadcast %cst_251 : f32 to vector<16x1xf32>
    %378 = arith.divf %376, %377 : vector<16x1xf32>
    %379 = vector.broadcast %378 : vector<16x1xf32> to vector<16x32xf32>
    %380 = arith.subf %370, %379 : vector<16x32xf32>
    %381 = arith.mulf %380, %380 : vector<16x32xf32>
    %cst_252 = arith.constant dense<0.000000e+00> : vector<16xf32>
    %382 = vector.multi_reduction <add>, %381, %cst_252 [1] : vector<16x32xf32> to vector<16xf32>
    %383 = vector.shape_cast %382 : vector<16xf32> to vector<16x1xf32>
    %cst_253 = arith.constant 3.200000e+01 : f32
    %384 = vector.broadcast %cst_253 : f32 to vector<16x1xf32>
    %385 = arith.divf %383, %384 : vector<16x1xf32>
    %386 = vector.broadcast %378 : vector<16x1xf32> to vector<16x32xf32>
    %387 = arith.subf %370, %386 : vector<16x32xf32>
    %cst_254 = arith.constant 9.99999996E-13 : f32
    %388 = vector.broadcast %cst_254 : f32 to vector<16x1xf32>
    %389 = arith.addf %385, %388 : vector<16x1xf32>
    %390 = math.rsqrt %389 : vector<16x1xf32>
    %391 = vector.broadcast %390 : vector<16x1xf32> to vector<16x32xf32>
    %392 = arith.mulf %387, %391 : vector<16x32xf32>
    %393 = vector.broadcast %372 : vector<1x32xf32> to vector<16x32xf32>
    %394 = arith.mulf %392, %393 : vector<16x32xf32>
    %395 = vector.broadcast %374 : vector<1x32xf32> to vector<16x32xf32>
    %396 = arith.addf %394, %395 : vector<16x32xf32>
    %397 = vector.shape_cast %396 : vector<16x32xf32> to vector<2x8x32xf32>
    %398 = vector.extract_strided_slice %397 {offsets = [0, 0, 0], sizes = [2, 1, 32], strides = [1, 1, 1]} : vector<2x8x32xf32> to vector<2x1x32xf32>
    %399 = vector.shape_cast %398 : vector<2x1x32xf32> to vector<2x32xf32>
    %c0_255 = arith.constant 0 : index
    %c0_256 = arith.constant 0 : index
    %400 = vector.load %arg24[%c0_255, %c0_256] : memref<32x32xf32, #tpu.memory_space<vmem>>, vector<32x32xf32>
    %cst_257 = arith.constant dense<0.000000e+00> : vector<2x32xf32>
    %401 = tpu.matmul %399, %400, %cst_257 {dimension_numbers = #tpu.dot_dimension_numbers<[1], [0], [0], [1], [0, 0, 1, 1], [], []>} : vector<2x32xf32>, vector<32x32xf32>, vector<2x32xf32> -> vector<2x32xf32>
    %c0_258 = arith.constant 0 : index
    %c0_259 = arith.constant 0 : index
    %402 = vector.load %arg25[%c0_258, %c0_259] : memref<1x32xf32, #tpu.memory_space<vmem>>, vector<1x32xf32>
    %403 = vector.broadcast %402 : vector<1x32xf32> to vector<2x32xf32>
    %404 = arith.addf %401, %403 : vector<2x32xf32>
    %405 = math.tanh %404 : vector<2x32xf32>
    %c0_260 = arith.constant 0 : index
    %c0_261 = arith.constant 0 : index
    %406 = vector.load %arg26[%c0_260, %c0_261] : memref<32x5xf32, #tpu.memory_space<vmem>>, vector<32x5xf32>
    %cst_262 = arith.constant dense<0.000000e+00> : vector<2x5xf32>
    %407 = tpu.matmul %405, %406, %cst_262 {dimension_numbers = #tpu.dot_dimension_numbers<[1], [0], [0], [1], [0, 0, 1, 1], [], []>} : vector<2x32xf32>, vector<32x5xf32>, vector<2x5xf32> -> vector<2x5xf32>
    %c0_263 = arith.constant 0 : index
    %c0_264 = arith.constant 0 : index
    %408 = vector.load %arg27[%c0_263, %c0_264] : memref<1x5xf32, #tpu.memory_space<vmem>>, vector<1x5xf32>
    %409 = vector.broadcast %408 : vector<1x5xf32> to vector<2x5xf32>
    %410 = arith.addf %407, %409 : vector<2x5xf32>
    %c0_265 = arith.constant 0 : index
    %c0_266 = arith.constant 0 : index
    %411 = vector.load %arg28[%c0_265, %c0_266] : memref<2x5xf32, #tpu.memory_space<vmem>>, vector<2x5xf32>
    tpu.vector_store %arg28[%c0_265, %c0_266], %410 {strides = array<i32>} : memref<2x5xf32, #tpu.memory_space<vmem>>, vector<2x5xf32>,
    return
  }
  func.func @transform_0(%arg0: i32) -> (i32, i32) {
    %c0_i32 = arith.constant 0 : i32
    %c0_i32_0 = arith.constant 0 : i32
    %c0_i32_1 = arith.constant 0 : i32
    return %c0_i32, %c0_i32_0 : i32, i32
  }
  func.func @transform_1(%arg0: i32) -> (i32, i32) {
    %c0_i32 = arith.constant 0 : i32
    %c0_i32_0 = arith.constant 0 : i32
    %c0_i32_1 = arith.constant 0 : i32
    return %c0_i32, %c0_i32_0 : i32, i32
  }
  func.func @transform_2(%arg0: i32) -> (i32, i32) {
    %c0_i32 = arith.constant 0 : i32
    %c0_i32_0 = arith.constant 0 : i32
    %c0_i32_1 = arith.constant 0 : i32
    return %c0_i32, %c0_i32_0 : i32, i32
  }
  func.func @transform_3(%arg0: i32) -> (i32, i32) {
    %c0_i32 = arith.constant 0 : i32
    %c0_i32_0 = arith.constant 0 : i32
    %c0_i32_1 = arith.constant 0 : i32
    return %c0_i32, %c0_i32_0 : i32, i32
  }
  func.func @transform_4(%arg0: i32) -> (i32, i32) {
    %c0_i32 = arith.constant 0 : i32
    %c0_i32_0 = arith.constant 0 : i32
    %c0_i32_1 = arith.constant 0 : i32
    return %c0_i32, %c0_i32_0 : i32, i32
  }
  func.func @transform_5(%arg0: i32) -> (i32, i32) {
    %c0_i32 = arith.constant 0 : i32
    %c0_i32_0 = arith.constant 0 : i32
    %c0_i32_1 = arith.constant 0 : i32
    return %c0_i32, %c0_i32_0 : i32, i32
  }
  func.func @transform_6(%arg0: i32) -> (i32, i32) {
    %c0_i32 = arith.constant 0 : i32
    %c0_i32_0 = arith.constant 0 : i32
    %c0_i32_1 = arith.constant 0 : i32
    return %c0_i32, %c0_i32_0 : i32, i32
  }
  func.func @transform_7(%arg0: i32) -> (i32, i32, i32, i32) {
    %c0_i32 = arith.constant 0 : i32
    %c0_i32_0 = arith.constant 0 : i32
    %c0_i32_1 = arith.constant 0 : i32
    %c0_i32_2 = arith.constant 0 : i32
    %c0_i32_3 = arith.constant 0 : i32
    return %c0_i32, %c0_i32_0, %c0_i32_1, %c0_i32_2 : i32, i32, i32, i32
  }
  func.func @transform_8(%arg0: i32) -> (i32, i32, i32, i32) {
    %c0_i32 = arith.constant 0 : i32
    %c0_i32_0 = arith.constant 0 : i32
    %c0_i32_1 = arith.constant 0 : i32
    %c0_i32_2 = arith.constant 0 : i32
    %c0_i32_3 = arith.constant 0 : i32
    return %c0_i32, %c0_i32_0, %c0_i32_1, %c0_i32_2 : i32, i32, i32, i32
  }
  func.func @transform_9(%arg0: i32) -> (i32, i32, i32, i32) {
    %c0_i32 = arith.constant 0 : i32
    %c0_i32_0 = arith.constant 0 : i32
    %c0_i32_1 = arith.constant 0 : i32
    %c0_i32_2 = arith.constant 0 : i32
    %c0_i32_3 = arith.constant 0 : i32
    return %c0_i32, %c0_i32_0, %c0_i32_1, %c0_i32_2 : i32, i32, i32, i32
  }
  func.func @transform_10(%arg0: i32) -> (i32, i32, i32, i32) {
    %c0_i32 = arith.constant 0 : i32
    %c0_i32_0 = arith.constant 0 : i32
    %c0_i32_1 = arith.constant 0 : i32
    %c0_i32_2 = arith.constant 0 : i32
    %c0_i32_3 = arith.constant 0 : i32
    return %c0_i32, %c0_i32_0, %c0_i32_1, %c0_i32_2 : i32, i32, i32, i32
  }
  func.func @transform_11(%arg0: i32) -> (i32, i32, i32, i32) {
    %c0_i32 = arith.constant 0 : i32
    %c0_i32_0 = arith.constant 0 : i32
    %c0_i32_1 = arith.constant 0 : i32
    %c0_i32_2 = arith.constant 0 : i32
    %c0_i32_3 = arith.constant 0 : i32
    return %c0_i32, %c0_i32_0, %c0_i32_1, %c0_i32_2 : i32, i32, i32, i32
  }
  func.func @transform_12(%arg0: i32) -> (i32, i32, i32, i32) {
    %c0_i32 = arith.constant 0 : i32
    %c0_i32_0 = arith.constant 0 : i32
    %c0_i32_1 = arith.constant 0 : i32
    %c0_i32_2 = arith.constant 0 : i32
    %c0_i32_3 = arith.constant 0 : i32
    return %c0_i32, %c0_i32_0, %c0_i32_1, %c0_i32_2 : i32, i32, i32, i32
  }
  func.func @transform_13(%arg0: i32) -> (i32, i32, i32, i32) {
    %c0_i32 = arith.constant 0 : i32
    %c0_i32_0 = arith.constant 0 : i32
    %c0_i32_1 = arith.constant 0 : i32
    %c0_i32_2 = arith.constant 0 : i32
    %c0_i32_3 = arith.constant 0 : i32
    return %c0_i32, %c0_i32_0, %c0_i32_1, %c0_i32_2 : i32, i32, i32, i32
  }
  func.func @transform_14(%arg0: i32) -> (i32, i32, i32) {
    %c0_i32 = arith.constant 0 : i32
    %c0_i32_0 = arith.constant 0 : i32
    %c0_i32_1 = arith.constant 0 : i32
    %c0_i32_2 = arith.constant 0 : i32
    return %c0_i32, %c0_i32_0, %c0_i32_1 : i32, i32, i32
  }
  func.func @transform_15(%arg0: i32) -> (i32, i32, i32) {
    %c0_i32 = arith.constant 0 : i32
    %c0_i32_0 = arith.constant 0 : i32
    %c0_i32_1 = arith.constant 0 : i32
    %c0_i32_2 = arith.constant 0 : i32
    return %c0_i32, %c0_i32_0, %c0_i32_1 : i32, i32, i32
  }
  func.func @transform_16(%arg0: i32) -> (i32, i32, i32) {
    %c0_i32 = arith.constant 0 : i32
    %c0_i32_0 = arith.constant 0 : i32
    %c0_i32_1 = arith.constant 0 : i32
    %c0_i32_2 = arith.constant 0 : i32
    return %c0_i32, %c0_i32_0, %c0_i32_1 : i32, i32, i32
  }
  func.func @transform_17(%arg0: i32) -> (i32, i32, i32) {
    %c0_i32 = arith.constant 0 : i32
    %c0_i32_0 = arith.constant 0 : i32
    %c0_i32_1 = arith.constant 0 : i32
    %c0_i32_2 = arith.constant 0 : i32
    return %c0_i32, %c0_i32_0, %c0_i32_1 : i32, i32, i32
  }
  func.func @transform_18(%arg0: i32) -> (i32, i32, i32) {
    %c0_i32 = arith.constant 0 : i32
    %c0_i32_0 = arith.constant 0 : i32
    %c0_i32_1 = arith.constant 0 : i32
    %c0_i32_2 = arith.constant 0 : i32
    return %c0_i32, %c0_i32_0, %c0_i32_1 : i32, i32, i32
  }
  func.func @transform_19(%arg0: i32) -> (i32, i32, i32) {
    %c0_i32 = arith.constant 0 : i32
    %c0_i32_0 = arith.constant 0 : i32
    %c0_i32_1 = arith.constant 0 : i32
    %c0_i32_2 = arith.constant 0 : i32
    return %c0_i32, %c0_i32_0, %c0_i32_1 : i32, i32, i32
  }
  func.func @transform_20(%arg0: i32) -> (i32, i32, i32) {
    %c0_i32 = arith.constant 0 : i32
    %c0_i32_0 = arith.constant 0 : i32
    %c0_i32_1 = arith.constant 0 : i32
    %c0_i32_2 = arith.constant 0 : i32
    return %c0_i32, %c0_i32_0, %c0_i32_1 : i32, i32, i32
  }
  func.func @transform_21(%arg0: i32) -> (i32, i32, i32) {
    %c0_i32 = arith.constant 0 : i32
    %c0_i32_0 = arith.constant 0 : i32
    %c0_i32_1 = arith.constant 0 : i32
    %c0_i32_2 = arith.constant 0 : i32
    return %c0_i32, %c0_i32_0, %c0_i32_1 : i32, i32, i32
  }
  func.func @transform_22(%arg0: i32) -> (i32, i32, i32) {
    %c0_i32 = arith.constant 0 : i32
    %c0_i32_0 = arith.constant 0 : i32
    %c0_i32_1 = arith.constant 0 : i32
    %c0_i32_2 = arith.constant 0 : i32
    return %c0_i32, %c0_i32_0, %c0_i32_1 : i32, i32, i32
  }
  func.func @transform_23(%arg0: i32) -> (i32, i32) {
    %c0_i32 = arith.constant 0 : i32
    %c0_i32_0 = arith.constant 0 : i32
    %c0_i32_1 = arith.constant 0 : i32
    return %c0_i32, %c0_i32_0 : i32, i32
  }
  func.func @transform_24(%arg0: i32) -> (i32, i32) {
    %c0_i32 = arith.constant 0 : i32
    %c0_i32_0 = arith.constant 0 : i32
    %c0_i32_1 = arith.constant 0 : i32
    return %c0_i32, %c0_i32_0 : i32, i32
  }
  func.func @transform_25(%arg0: i32) -> (i32, i32) {
    %c0_i32 = arith.constant 0 : i32
    %c0_i32_0 = arith.constant 0 : i32
    %c0_i32_1 = arith.constant 0 : i32
    return %c0_i32, %c0_i32_0 : i32, i32
  }
  func.func @transform_26(%arg0: i32) -> (i32, i32) {
    %c0_i32 = arith.constant 0 : i32
    %c0_i32_0 = arith.constant 0 : i32
    %c0_i32_1 = arith.constant 0 : i32
    return %c0_i32, %c0_i32_0 : i32, i32
  }
  func.func @transform_27(%arg0: i32) -> (i32, i32) {
    %c0_i32 = arith.constant 0 : i32
    %c0_i32_0 = arith.constant 0 : i32
    %c0_i32_1 = arith.constant 0 : i32
    return %c0_i32, %c0_i32_0 : i32, i32
  }
}

</mosaic_0001>

<bundles_post_ra>
// kernel: _forward.1
= control target key start
LH: loop header
LB: loop body
LE: loop exit
PB: predicated region body
PF: predicated region fallthrough
CT: control target
= control target key end

     0   :  { %v2103_v0 = vmov 0   ;;  %v88_v19 = vlaneseq  ;;  %v2104_v22 = vmov 1.0   ;;  %vm150_vm2 = vcmask 261120   ;;  %s2852_s0 = inlined_call_operand.vmem [shape: s32[16,1], index: 0, kind: input, shape index: {}]   ;;  %s2853_s2 = inlined_call_operand.vmem [shape: f32[128,32], index: 2, kind: input, shape index: {}]   ;;  %s2854_s4 = inlined_call_operand.vmem [shape: f32[2,32], index: 4, kind: input, shape index: {}]   ;;  %s2855_s3 = inlined_call_operand.vmem [shape: f32[16,32], index: 3, kind: input, shape index: {}]   ;;  %s2856_s5 = inlined_call_operand.vmem [shape: f32[1,32], index: 5, kind: input, shape index: {}]   ;;  %s2857_s6 = inlined_call_operand.vmem [shape: f32[1,32], index: 6, kind: input, shape index: {}]   ;;  %s2858_s8 = inlined_call_operand.vmem [shape: f32[2,2,1,16], index: 8, kind: input, shape index: {}]   ;;  %s2859_s7 = inlined_call_operand.vmem [shape: f32[2,2,32,16], index: 7, kind: input, shape index: {}]   ;;  %s2860_s9 = inlined_call_operand.vmem [shape: f32[2,2,32,16], index: 9, kind: input, shape index: {}]   ;;  %s2861_s11 = inlined_call_operand.vmem [shape: f32[2,2,32,16], index: 11, kind: input, shape index: {}]   ;;  %s2862_s10 = inlined_call_operand.vmem [shape: f32[2,2,1,16], index: 10, kind: input, shape index: {}]   ;;  %s2863_s12 = inlined_call_operand.vmem [shape: f32[2,2,1,16], index: 12, kind: input, shape index: {}]   ;;  %s2864_s1 = inlined_call_operand.vmem [shape: s32[2,8], index: 1, kind: input, shape index: {}]   ;;  %s2865_s13 = inlined_call_operand.vmem [shape: f32[2,2,16,32], index: 13, kind: input, shape index: {}]   ;;  %s2866_s14 = inlined_call_operand.vmem [shape: f32[2,1,32], index: 14, kind: input, shape index: {}]   ;;  %s2867_s15 = inlined_call_operand.vmem [shape: f32[2,1,32], index: 15, kind: input, shape index: {}]   ;;  %s2868_s16 = inlined_call_operand.vmem [shape: f32[2,1,32], index: 16, kind: input, shape index: {}]   ;;  %s2869_s18 = inlined_call_operand.vmem [shape: f32[2,1,64], index: 18, kind: input, shape index: {}]   ;;  %s2870_s17 = inlined_call_operand.vmem [shape: f32[2,32,64], index: 17, kind: input, shape index: {}]   ;;  %s2871_s20 = inlined_call_operand.vmem [shape: f32[2,1,32], index: 20, kind: input, shape index: {}]   ;;  %s2872_s19 = inlined_call_operand.vmem [shape: f32[2,64,32], index: 19, kind: input, shape index: {}]   ;;  %s2873_s21 = inlined_call_operand.vmem [shape: f32[2,1,32], index: 21, kind: input, shape index: {}]   ;;  %s2874_s22 = inlined_call_operand.vmem [shape: f32[2,1,32], index: 22, kind: input, shape index: {}]   ;;  %s2875_s24 = inlined_call_operand.vmem [shape: f32[1,32], index: 24, kind: input, shape index: {}]   ;;  %s2876_s23 = inlined_call_operand.vmem [shape: f32[32,32], index: 23, kind: input, shape index: {}]   ;;  %s2877_s26 = inlined_call_operand.vmem [shape: f32[1,5], index: 26, kind: input, shape index: {}]   ;;  %s2878_s25 = inlined_call_operand.vmem [shape: f32[32,5], index: 25, kind: input, shape index: {}]   ;;  %s2879_s27 = inlined_call_operand.vmem [shape: f32[2,5], index: 27, kind: output, shape index: {}]  }
   0x1   :  { %2888 = sst [smem:[#allocation2_spill]] %s2852_s0  ;;  %2007 = vset.pattern.permute.xlu0 %v2103_v0  ;;  %v2105_v34 = vmov 32.0   ;;  %vm323_vm10 = vcmask 130048   ;;  %vm376_vm11 = vcmask 64512  }
   0x2   :  { %2889 = sst [smem:[#allocation3_spill]] %s2853_s2  ;;  %v89_v20 = vand.u32 127, %v88_v19  ;;  %2039 = vrcp.f32 %v2105_v34 }
   0x3   :  { %2890 = sst [smem:[#allocation4_spill]] %s2854_s4 }
   0x4   :  { %2891 = sst [smem:[#allocation5_spill]] %s2855_s3 }
   0x5   :  { %2892 = sst [smem:[#allocation6_spill]] %s2856_s5 }
   0x6   :  { %2893 = sst [smem:[#allocation7_spill]] %s2857_s6 }
   0x7   :  { %2894 = sst [smem:[#allocation8_spill]] %s2858_s8 }
   0x8   :  { %2895 = sst [smem:[#allocation9_spill]] %s2859_s7  ;;  %v2040_v35 = vpop.eup %2039 }
   0x9   :  { %2896 = sst [smem:[#allocation10_spill]] %s2860_s9  ;;  %v158_v36 = vmul.f32 32.0, %v2040_v35  ;;  %vm162_vm3 = vweird.f32 %v2040_v35 }
   0xa   :  { %2897 = sst [smem:[#allocation11_spill]] %s2861_s11 }
   0xb   :  { %2898 = sst [smem:[#allocation12_spill]] %s2862_s10  ;;  %v159_v37 = vsub.f32 1.0, %v158_v36 }
   0xc   :  { %2899 = sst [smem:[#allocation13_spill]] %s2863_s12 }
   0xd   :  { %s2900_s9 = sld [smem:[#allocation2_spill]]  ;;  %v160_v38 = vmul.f32 %v2040_v35, %v159_v37 }
   0xe   :  { %s2901_s6 = sld [smem:[#allocation3_spill]] }
   0xf   :  { %s2902_s12 = sld [smem:[#allocation5_spill]]  ;;  %v161_v39 = vadd.f32 %v2040_v35, %v160_v38 }
  0x10   :  { %s2903_s7 = sld [smem:[#allocation4_spill]] }
  0x11   :  { %v2308_v40 = vsel %vm162_vm3, %v2040_v35, %v161_v39  ;;  %s2904_s30 = sld [smem:[#allocation9_spill]] }
  0x12   :  { %s2905_s0 = sld [smem:[#allocation10_spill]] }
  0x13   :  { %v86_v1 = vld [vmem:[%s2900_s9] sm:$0xff]  ;;  %v87_v6 = vld [vmem:[%s2900_s9 + $0x8] sm:$0xff]  ;;  %s2906_s29 = sld [smem:[#allocation11_spill]] }
  0x14   :  { %v117_v2 = vld [vmem:[%s2901_s6 + $0x78] sm:$0xff]  ;;  %91 = vperm.xlu0 %2007, %v86_v1   ;;  %v116_v3 = vld [vmem:[%s2901_s6 + $0x70] sm:$0xff]  ;;  %v115_v4 = vld [vmem:[%s2901_s6 + $0x68] sm:$0xff]  ;;  %s2907_s11 = sld [smem:[#allocation6_spill]] }
  0x15   :  { %118 = vmatpush.msra.mxu0 %v117_v2  ;;  %v114_v5 = vld [vmem:[%s2901_s6 + $0x60] sm:$0xff]  ;;  %v113_v7 = vld [vmem:[%s2901_s6 + $0x58] sm:$0xff]  ;;  %v112_v8 = vld [vmem:[%s2901_s6 + $0x50] sm:$0xff]  ;;  %s2908_s9 = sld [smem:[#allocation7_spill]] }
  0x16   :  { %v111_v9 = vld [vmem:[%s2901_s6 + $0x48] sm:$0xff]  ;;  %v110_v10 = vld [vmem:[%s2901_s6 + $0x40] sm:$0xff]  ;;  %v109_v11 = vld [vmem:[%s2901_s6 + $0x38] sm:$0xff] }
  0x17   :  { %119 = vmatpush.msra.mxu0 %v116_v3  ;;  %v108_v12 = vld [vmem:[%s2901_s6 + $0x30] sm:$0xff]  ;;  %v107_v13 = vld [vmem:[%s2901_s6 + $0x28] sm:$0xff]  ;;  %v106_v14 = vld [vmem:[%s2901_s6 + $0x20] sm:$0xff] }
  0x18   :  { %v105_v15 = vld [vmem:[%s2901_s6 + $0x18] sm:$0xff]  ;;  %v104_v16 = vld [vmem:[%s2901_s6 + $0x10] sm:$0xff]  ;;  %v103_v17 = vld [vmem:[%s2901_s6 + $0x8] sm:$0xff] }
  0x19   :  { %120 = vmatpush.msra.mxu0 %v115_v4  ;;  %v102_v18 = vld [vmem:[%s2901_s6] sm:$0xff]  ;;  %v221_v51 = vld [vmem:[%s2904_s30 + $0x18] sm:$0xff]  ;;  %v220_v54 = vld [vmem:[%s2904_s30 + $0x10] sm:$0xff] }
  0x1a   :  { %v141_v24 = vld [vmem:[%s2902_s12] sm:$0xff]  ;;  %v260_v52 = vld [vmem:[%s2905_s0 + $0x18] sm:$0xff]  ;;  %244 = vmatpush.msra.mxu1 %v221_v51  ;;  %v259_v55 = vld [vmem:[%s2905_s0 + $0x10] sm:$0xff]  ;;  %s2909_s12 = sld [smem:[#allocation8_spill]] }
  0x1b   :  { %121 = vmatpush.msra.mxu0 %v114_v5  ;;  %v2008_v25 = vld [vmem:[%s2903_s7] ss:$0 sm:$0xff]  ;;  %v291_v53 = vld [vmem:[%s2906_s29 + $0x18] sm:$0xff]  ;;  %277 = vmatpush.msra.mxu2 %v260_v52  ;;  %v290_v56 = vld [vmem:[%s2906_s29 + $0x10] sm:$0xff]  ;;  %s2910_s7 = sld [smem:[#allocation12_spill]] }
  0x1c   :  { %94 = vperm.xlu0 %2007, %v87_v6   ;;  %308 = vmatpush.msra.mxu3 %v291_v53  ;;  %v219_v57 = vld [vmem:[%s2904_s30 + $0x8] sm:$0xff]  ;;  %v218_v60 = vld [vmem:[%s2904_s30] sm:$0xff] }
  0x1d   :  { %122 = vmatpush.msra.mxu0 %v113_v7  ;;  %245 = vmatpush.msra.mxu1 %v220_v54  ;;  %v258_v58 = vld [vmem:[%s2905_s0 + $0x8] sm:$0xff]  ;;  %v257_v61 = vld [vmem:[%s2905_s0] sm:$0xff] }
  0x1e   :  { %278 = vmatpush.msra.mxu2 %v259_v55  ;;  %309 = vmatpush.msra.mxu3 %v290_v56  ;;  %v289_v59 = vld [vmem:[%s2906_s29 + $0x8] sm:$0xff]  ;;  %v288_v62 = vld [vmem:[%s2906_s29] sm:$0xff] }
  0x1f   :  { %123 = vmatpush.msra.mxu0 %v112_v8  ;;  %246 = vmatpush.msra.mxu1 %v219_v57 }
  0x20   :  { %279 = vmatpush.msra.mxu2 %v258_v58  ;;  %310 = vmatpush.msra.mxu3 %v289_v59 }
  0x21   :  { %124 = vmatpush.msra.mxu0 %v111_v9  ;;  %247 = vmatpush.msra.mxu1 %v218_v60 }
  0x22   :  { %280 = vmatpush.msra.mxu2 %v257_v61  ;;  %311 = vmatpush.msra.mxu3 %v288_v62 }
  0x23   :  { %125 = vmatpush.msra.mxu0 %v110_v10 }
  0x25   :  { %126 = vmatpush.msra.mxu0 %v109_v11 }
  0x27   :  { %127 = vmatpush.msra.mxu0 %v108_v12 }
  0x29   :  { %128 = vmatpush.msra.mxu0 %v107_v13  ;;  %v2009_v13 = vld [vmem:[%s2907_s11] ss:$0 sm:$0xff]  ;;  %s2911_s11 = sld [smem:[#allocation13_spill]] }
  0x2b   :  { %129 = vmatpush.msra.mxu0 %v106_v14 }
  0x2d   :  { %130 = vmatpush.msra.mxu0 %v105_v15 }
  0x2f   :  { %131 = vmatpush.msra.mxu0 %v104_v16  ;;  %v2010_v16 = vld [vmem:[%s2908_s9] ss:$0 sm:$0xff] }
  0x31   :  { %132 = vmatpush.msra.mxu0 %v103_v17 }
  0x33   :  { %133 = vmatpush.msra.mxu0 %v102_v18 }
  0x86   :  { %v92_v21 = vpop.permute.xlu0 %91 }
  0x87   :  { %vm96_vm0 = vcmp.eq.s32.totalorder %v92_v21, %v89_v20 }
  0x88   :  { %1866 = vmatmul.msk.f32.vlgmr.msra.gmra.mxu0 %vm96_vm0, %v2104_v22 }
  0x8e   :  { %v95_v23 = vpop.permute.xlu0 %94 }
  0x8f   :  { %vm97_vm1 = vcmp.eq.s32.totalorder %v95_v23, %v89_v20 }
  0x90   :  { %1867 = vmatmul.msk.f32.gmra.mxu0 %vm97_vm1, %v2104_v22 }
 0x105   :  { %v135_v26 = vpop.f32.mrf.mxu0 }
 0x106   :  { %v142_v27 = vadd.f32 %v141_v24, %v135_v26 }
 0x108   :  { %v146_v28 = vadd.f32 %v2008_v25, %v142_v27 }
 0x10a   :  { %v151_v29 = vsel %vm150_vm2, %v146_v28, 0.0 }
 0x10b   :  { %152 = vadd.xlane.f32.xlu1 %v151_v29  ;;  %v2012_v29 = vld [vmem:[%s2910_s7] ss:$0 sm:$0xff] }
 0x10d   :  { %v138_v30 = vpop.f32.mrf.mxu0 }
 0x10e   :  { %v143_v31 = vadd.f32 %v141_v24, %v138_v30  ;;  %v2013_v30 = vld [vmem:[%s2911_s11] ss:$0 sm:$0xff] }
 0x110   :  { %v147_v32 = vadd.f32 %v2008_v25, %v143_v31 }
 0x112   :  { %v154_v33 = vsel %vm150_vm2, %v147_v32, 0.0 }
 0x113   :  { %155 = vadd.xlane.f32.xlu2 %v154_v33 }
 0x17e   :  { %v153_v41 = vpop.xlane.xlu1 %152 }
 0x17f   :  { %v164_v42 = vmul.f32 %v2308_v40, %v153_v41 }
 0x181   :  { %v166_v43 = vsub.f32 %v146_v28, %v164_v42  ;;  %v2011_v28 = vld [vmem:[%s2909_s12] ss:$0 sm:$0xff] }
 0x183   :  { %v168_v44 = vmul.f32 %v166_v43, %v166_v43 }
 0x185   :  { %v170_v45 = vsel %vm150_vm2, %v168_v44, 0.0 }
 0x186   :  { %171 = vadd.xlane.f32.xlu1 %v170_v45  ;;  %v156_v46 = vpop.xlane.xlu2 %155 }
 0x187   :  { %v165_v47 = vmul.f32 %v2308_v40, %v156_v46  ;;  %v1882_v46 = vld [vmem:[%s2904_s30 + $0x30] sm:$0xff] }
 0x189   :  { %v2313_v48 = vsub.f32 %v147_v32, %v165_v47  ;;  %v1881_v47 = vld [vmem:[%s2904_s30 + $0x28] sm:$0xff] }
 0x18b   :  { %v169_v49 = vmul.f32 %v2313_v48, %v2313_v48 }
 0x18d   :  { %v173_v50 = vsel %vm150_vm2, %v169_v49, 0.0  ;;  %v212_v49 = vld [vmem:[%s2864_s1] sm:$0x3] }
 0x18e   :  { %174 = vadd.xlane.f32.xlu2 %v173_v50  ;;  %v213_v50 = vcvt.s32.f32 %v212_v49 }
 0x190   :  { %v214_v51 = vsub.f32 1.0, %v213_v50 }
 0x192   :  { %v215_v52 = vmul.f32 -10000.0, %v214_v51 }
 0x194   :  { %v2411_v53 = vperm.slane %v215_v52, 0  ;;  %v217_v57 = vrot.slane %v215_v52, 1 }
 0x196   :  { %v2415_v58 = vperm.slane %v217_v57, 0 }
 0x1f9   :  { %v172_v63 = vpop.xlane.xlu1 %171 }
 0x1fa   :  { %v176_v0 = vmul.f32 %v172_v63, %v2308_v40 }
 0x1fc   :  { %v178_v1 = vadd.f32 1e-12, %v176_v0 }
 0x1fe   :  { %2041 = vrsqrt.f32 %v178_v1  ;;  %vm186_vm5 = vweird.f32 %v178_v1 }
 0x201   :  { %v175_v2 = vpop.xlane.xlu2 %174 }
 0x202   :  { %v177_v3 = vmul.f32 %v175_v2, %v2308_v40 }
 0x204   :  { %v2042_v4 = vpop.eup %2041  ;;  %v179_v5 = vadd.f32 1e-12, %v177_v3 }
 0x205   :  { %v181_v6 = vmul.f32 %v2042_v4, %v178_v1  ;;  %vm187_vm4 = vweird.f32 %v2042_v4 }
 0x206   :  { %2043 = vrsqrt.f32 %v179_v5  ;;  %vm188_vm6 = vmor %vm186_vm5, %vm187_vm4  ;;  %vm196_vm8 = vweird.f32 %v179_v5 }
 0x207   :  { %v182_v7 = vmul.f32 %v2042_v4, %v181_v6 }
 0x209   :  { %v183_v8 = vmul.f32 0.5, %v182_v7 }
 0x20b   :  { %v184_v9 = vsub.f32 1.5, %v183_v8  ;;  %v1890_v8 = vld [vmem:[%s2905_s0 + $0x38] sm:$0xff] }
 0x20c   :  { %v2044_v10 = vpop.eup %2043 }
 0x20d   :  { %v185_v11 = vmul.f32 %v2042_v4, %v184_v9  ;;  %v191_v12 = vmul.f32 %v2044_v10, %v179_v5  ;;  %vm197_vm7 = vweird.f32 %v2044_v10  ;;  %v1889_v9 = vld [vmem:[%s2905_s0 + $0x30] sm:$0xff] }
 0x20e   :  { %vm198_vm9 = vmor %vm196_vm8, %vm197_vm7 }
 0x20f   :  { %v189_v14 = vsel %vm188_vm6, %v2042_v4, %v185_v11  ;;  %v192_v15 = vmul.f32 %v2044_v10, %v191_v12  ;;  %v1887_v11 = vld [vmem:[%s2905_s0 + $0x20] sm:$0xff] }
 0x210   :  { %v200_v17 = vmul.f32 %v189_v14, %v166_v43  ;;  %v1883_v43 = vld [vmem:[%s2904_s30 + $0x38] sm:$0xff]  ;;  %v1896_v14 = vld [vmem:[%s2906_s29 + $0x30] sm:$0xff] }
 0x211   :  { %v193_v18 = vmul.f32 0.5, %v192_v15  ;;  %v1895_v15 = vld [vmem:[%s2906_s29 + $0x28] sm:$0xff] }
 0x212   :  { %v205_v19 = vmul.f32 %v2009_v13, %v200_v17 }
 0x213   :  { %v194_v20 = vsub.f32 1.5, %v193_v18 }
 0x214   :  { %v2362_v21 = vadd.f32 %v2010_v16, %v205_v19 }
 0x215   :  { %v195_v22 = vmul.f32 %v2044_v10, %v194_v20 }
 0x216   :  { %1868 = vmatmul.msk.f32.vlgmr.msra.gmra.mxu1 %vm150_vm2, %v2362_v21  ;;  %1870 = vmatmul.msk.f32.vlgmr.msra.gmra.mxu2 %vm150_vm2, %v2362_v21 }
 0x217   :  { %v199_v23 = vsel %vm198_vm9, %v2044_v10, %v195_v22  ;;  %1872 = vmatmul.msk.f32.vlgmr.msra.gmra.mxu3 %vm150_vm2, %v2362_v21  ;;  %v1888_v10 = vld [vmem:[%s2905_s0 + $0x28] sm:$0xff] }
 0x218   :  { %v201_v24 = vmul.f32 %v199_v23, %v2313_v48  ;;  %v1880_v48 = vld [vmem:[%s2904_s30 + $0x20] sm:$0xff] }
 0x21a   :  { %v206_v25 = vmul.f32 %v2009_v13, %v201_v24  ;;  %v1897_v13 = vld [vmem:[%s2906_s29 + $0x38] sm:$0xff] }
 0x21c   :  { %v2371_v26 = vadd.f32 %v2010_v16, %v206_v25  ;;  %v1894_v16 = vld [vmem:[%s2906_s29 + $0x20] sm:$0xff] }
 0x21e   :  { %1869 = vmatmul.msk.f32.gmra.mxu1 %vm150_vm2, %v2371_v26  ;;  %1871 = vmatmul.msk.f32.gmra.mxu2 %vm150_vm2, %v2371_v26 }
 0x21f   :  { %1873 = vmatmul.msk.f32.gmra.mxu3 %vm150_vm2, %v2371_v26 }
 0x293   :  { %v249_v27 = vpop.f32.mrf.mxu1 }
 0x294   :  { %v250_v31 = vadd.f32 %v2011_v28, %v249_v27 }
 0x296   :  { %v255_v36 = vmul.f32 0.25, %v250_v31 }
 0x299   :  { %v282_v32 = vpop.f32.mrf.mxu2 }
 0x29a   :  { %v283_v33 = vadd.f32 %v2012_v29, %v282_v32  ;;  %v313_v34 = vpop.f32.mrf.mxu3 }
 0x29b   :  { %v314_v35 = vadd.f32 %v2013_v30, %v313_v34  ;;  %v252_v37 = vpop.f32.mrf.mxu1 }
 0x29c   :  { %1874 = vmatpush.xpose.msk.msrb.mxu1 %vm323_vm10, %v283_v33  ;;  %v253_v38 = vadd.f32 %v2011_v28, %v252_v37 }
 0x29d   :  { %443 = vmatpush.msrb.mxu3 %v314_v35 }
 0x29e   :  { %v256_v45 = vmul.f32 0.25, %v253_v38 }
 0x29f   :  { %1875 = vmatmul.msk.f32.vlgmr.msrb.gmra.mxu1 %vm323_vm10, %v255_v36  ;;  %530 = vmatpush.msra.mxu3 %v1890_v8 }
 0x2a1   :  { %v285_v39 = vpop.f32.mrf.mxu2  ;;  %531 = vmatpush.msra.mxu3 %v1889_v9 }
 0x2a2   :  { %v286_v41 = vadd.f32 %v2012_v29, %v285_v39  ;;  %v316_v42 = vpop.f32.mrf.mxu3 }
 0x2a3   :  { %v317_v44 = vadd.f32 %v2013_v30, %v316_v42  ;;  %532 = vmatpush.msra.mxu3 %v1888_v10 }
 0x2a4   :  { %1876 = vmatpush.xpose.msk.msrb.mxu2 %vm323_vm10, %v286_v41 }
 0x2a5   :  { %466 = vmatpush.msra.mxu1 %v317_v44  ;;  %533 = vmatpush.msra.mxu3 %v1887_v11 }
 0x2a7   :  { %1877 = vmatmul.msk.f32.vlgmr.msrb.gmra.mxu2 %vm323_vm10, %v256_v45  ;;  %563 = vmatpush.msrb.mxu1 %v1897_v13  ;;  %v2014_v45 = vld [vmem:[%s2909_s12 + $0x1] ss:$0 sm:$0xff] }
 0x2a8   :  { %495 = vmatpush.msra.mxu2 %v1883_v43 }
 0x2a9   :  { %564 = vmatpush.msrb.mxu1 %v1896_v14 }
 0x2aa   :  { %496 = vmatpush.msra.mxu2 %v1882_v46  ;;  %v2015_v46 = vld [vmem:[%s2910_s7 + $0x1] ss:$0 sm:$0xff] }
 0x2ab   :  { %565 = vmatpush.msrb.mxu1 %v1895_v15 }
 0x2ac   :  { %497 = vmatpush.msra.mxu2 %v1881_v47 }
 0x2ad   :  { %566 = vmatpush.msrb.mxu1 %v1894_v16 }
 0x2ae   :  { %498 = vmatpush.msra.mxu2 %v1880_v48 }
 0x2af   :  { %1885 = vmatmul.msk.f32.vlgmr.msra.gmra.mxu2 %vm150_vm2, %v2362_v21 }
 0x2b7   :  { %1886 = vmatmul.msk.f32.gmra.mxu2 %vm150_vm2, %v2371_v26 }
 0x31c   :  { %v347_v54 = vpop.f32.mrf.mxu1 }
 0x31d   :  { %v348_v55 = vadd.f32 %v347_v54, %v2411_v53  ;;  %v2016_v54 = vld [vmem:[%s2911_s11 + $0x1] ss:$0 sm:$0xff] }
 0x31f   :  { %v377_v56 = vsel %vm376_vm11, %v348_v55, -inf }
 0x320   :  { %378 = vmax.xlane.f32.xlu0 %v377_v56 }
 0x32a   :  { %v373_v59 = vpop.f32.mrf.mxu2 }
 0x32b   :  { %v374_v60 = vadd.f32 %v373_v59, %v2415_v58 }
 0x32d   :  { %v380_v61 = vsel %vm376_vm11, %v374_v60, -inf }
 0x32e   :  { %381 = vmax.xlane.f32.xlu2 %v380_v61  ;;  %v472_v61 = vld [vmem:[%s2865_s13 + $0x8] sm:$0xff] }
 0x332   :  { %v500_v44 = vpop.f32.mrf.mxu2 }
 0x333   :  { %v501_v47 = vadd.f32 %v2014_v45, %v500_v44 }
 0x335   :  { %v506_v51 = vmul.f32 0.25, %v501_v47 }
 0x33a   :  { %v503_v52 = vpop.f32.mrf.mxu2 }
 0x393   :  { %v379_v62 = vpop.xlane.xlu0 %378 }
 0x394   :  { %v383_v63 = vsub.f32 %v348_v55, %v379_v62  ;;  %v504_v55 = vadd.f32 %v2014_v45, %v503_v52 }
 0x396   :  { %v385_v0 = vmul.f32 1.442695, %v383_v63  ;;  %v507_v62 = vmul.f32 0.25, %v504_v55  ;;  %v471_v63 = vld [vmem:[%s2865_s13] sm:$0xff] }
 0x398   :  { %2045 = vpow2.f32 %v385_v0 }
 0x39e   :  { %v2046_v1 = vpop.eup %2045 }
 0x39f   :  { %v389_v2 = vsel %vm376_vm11, %v2046_v1, 0.0 }
 0x3a0   :  { %390 = vadd.xlane.f32.xlu1 %v389_v2 }
 0x3a1   :  { %v382_v3 = vpop.xlane.xlu2 %381 }
 0x3a2   :  { %v384_v4 = vsub.f32 %v374_v60, %v382_v3 }
 0x3a4   :  { %v387_v5 = vmul.f32 1.442695, %v384_v4 }
 0x3a6   :  { %2047 = vpow2.f32 %v387_v5 }
 0x3ac   :  { %v2048_v6 = vpop.eup %2047 }
 0x3ad   :  { %v392_v7 = vsel %vm376_vm11, %v2048_v6, 0.0 }
 0x3ae   :  { %393 = vadd.xlane.f32.xlu1 %v392_v7 }
 0x413   :  { %v391_v12 = vpop.xlane.xlu1 %390 }
 0x414   :  { %2049 = vrcp.f32 %v391_v12  ;;  %v406_v20 = vand.u32 2147483648, %v391_v12  ;;  %v404_v23 = vand.u32 2147483647, %v391_v12  ;;  %vm400_vm13 = vweird.f32 %v391_v12 }
 0x416   :  { %v407_v27 = vor.u32 1.1754944e-38, %v406_v20  ;;  %vm405_vm15 = vcmp.eq.f32.partialorder %v404_v23, 8.507059e+37 }
 0x41a   :  { %v2050_v17 = vpop.eup %2049 }
 0x41b   :  { %v396_v18 = vmul.f32 %v2050_v17, %v391_v12  ;;  %vm401_vm12 = vweird.f32 %v2050_v17 }
 0x41c   :  { %vm402_vm14 = vmor %vm400_vm13, %vm401_vm12 }
 0x41d   :  { %v397_v19 = vsub.f32 1.0, %v396_v18 }
 0x41f   :  { %v398_v22 = vmul.f32 %v2050_v17, %v397_v19  ;;  %v1908_v19 = vld [vmem:[%s2865_s13 + $0x18] sm:$0xff] }
 0x421   :  { %v399_v24 = vadd.f32 %v2050_v17, %v398_v22  ;;  %v394_v25 = vpop.xlane.xlu1 %393 }
 0x422   :  { %2051 = vrcp.f32 %v394_v25  ;;  %v421_v34 = vand.u32 2147483648, %v394_v25  ;;  %v419_v36 = vand.u32 2147483647, %v394_v25  ;;  %vm415_vm1 = vweird.f32 %v394_v25 }
 0x423   :  { %v403_v28 = vsel %vm402_vm14, %v2050_v17, %v399_v24 }
 0x424   :  { %v408_v29 = vsel %vm405_vm15, %v407_v27, %v403_v28  ;;  %v422_v38 = vor.u32 1.1754944e-38, %v421_v34  ;;  %vm420_vm4 = vcmp.eq.f32.partialorder %v419_v36, 8.507059e+37 }
 0x425   :  { %v409_v30 = vmul.f32 %v2046_v1, %v408_v29 }
 0x427   :  { %1878 = vmatmul.msk.f32.vlgmr.msrb.gmra.mxu3 %vm376_vm11, %v409_v30 }
 0x428   :  { %v2052_v31 = vpop.eup %2051 }
 0x429   :  { %v411_v32 = vmul.f32 %v2052_v31, %v394_v25  ;;  %vm416_vm0 = vweird.f32 %v2052_v31 }
 0x42a   :  { %vm417_vm3 = vmor %vm415_vm1, %vm416_vm0 }
 0x42b   :  { %v412_v33 = vsub.f32 1.0, %v411_v32 }
 0x42d   :  { %v413_v35 = vmul.f32 %v2052_v31, %v412_v33 }
 0x42f   :  { %v414_v37 = vadd.f32 %v2052_v31, %v413_v35  ;;  %1892 = vmatmul.msk.f32.vlgmr.msra.gmra.mxu3 %vm150_vm2, %v2362_v21 }
 0x431   :  { %v418_v39 = vsel %vm417_vm3, %v2052_v31, %v414_v37 }
 0x432   :  { %v423_v41 = vsel %vm420_vm4, %v422_v38, %v418_v39 }
 0x433   :  { %v424_v42 = vmul.f32 %v2048_v6, %v423_v41 }
 0x435   :  { %1879 = vmatmul.msk.f32.vlgmr.msra.gmra.mxu1 %vm376_vm11, %v424_v42 }
 0x436   :  { %743 = vmatpush.msra.mxu1 %v1908_v19 }
 0x437   :  { %1893 = vmatmul.msk.f32.gmra.mxu3 %vm150_vm2, %v2371_v26 }
 0x43d   :  { %1899 = vmatmul.msk.f32.vlgmr.msrb.gmra.mxu1 %vm150_vm2, %v2362_v21 }
 0x445   :  { %1900 = vmatmul.msk.f32.gmra.mxu1 %vm150_vm2, %v2371_v26 }
 0x4aa   :  { %v445_v43 = vpop.f32.mrf.mxu3 }
 0x4b2   :  { %v468_v48 = vpop.f32.mrf.mxu1  ;;  %v535_v49 = vpop.f32.mrf.mxu3 }
 0x4b3   :  { %v536_v50 = vadd.f32 %v2015_v46, %v535_v49 }
 0x4b5   :  { %1901 = vmatpush.xpose.msk.msrb.mxu0 %vm323_vm10, %v536_v50  ;;  %v2017_v50 = vld [vmem:[%s2866_s14] ss:$0 sm:$0xff] }
 0x4b8   :  { %1902 = vmatmul.msk.f32.vlgmr.msrb.gmra.mxu0 %vm323_vm10, %v506_v51 }
 0x4ba   :  { %v538_v56 = vpop.f32.mrf.mxu3  ;;  %v568_v57 = vpop.f32.mrf.mxu1 }
 0x4bb   :  { %v539_v59 = vadd.f32 %v2015_v46, %v538_v56  ;;  %v569_v60 = vadd.f32 %v2016_v54, %v568_v57  ;;  %v1907_v46 = vld [vmem:[%s2865_s13 + $0x10] sm:$0xff] }
 0x4bc   :  { %744 = vmatpush.msra.mxu1 %v1907_v46  ;;  %v904_v46 = vld [vmem:[%s2872_s19 + $0x20] sm:$0xff] }
 0x4bd   :  { %1903 = vmatpush.xpose.msk.msrb.mxu2 %vm323_vm10, %v539_v59  ;;  %692 = vmatpush.msrb.mxu3 %v569_v60 }
 0x4c0   :  { %1904 = vmatmul.msk.f32.vlgmr.msrb.gmra.mxu2 %vm323_vm10, %v507_v62 }
 0x4c1   :  { %772 = vmatpush.msra.mxu2 %v472_v61 }
 0x4c2   :  { %v571_v0 = vpop.f32.mrf.mxu1 }
 0x4c3   :  { %773 = vmatpush.msra.mxu2 %v471_v63  ;;  %v572_v1 = vadd.f32 %v2016_v54, %v571_v0 }
 0x4c5   :  { %715 = vmatpush.msra.mxu0 %v572_v1 }
 0x4c8   :  { %1911 = vmatmul.msk.f32.vlgmr.msra.gmra.mxu2 %vm323_vm10, %v445_v43 }
 0x4d0   :  { %1912 = vmatmul.msk.f32.gmra.mxu2 %vm323_vm10, %v468_v48 }
 0x535   :  { %v597_v2 = vpop.f32.mrf.mxu0 }
 0x536   :  { %v598_v3 = vadd.f32 %v597_v2, %v2411_v53 }
 0x538   :  { %v626_v4 = vsel %vm376_vm11, %v598_v3, -inf }
 0x539   :  { %627 = vmax.xlane.f32.xlu2 %v626_v4 }
 0x543   :  { %v623_v5 = vpop.f32.mrf.mxu2 }
 0x544   :  { %v624_v6 = vadd.f32 %v623_v5, %v2415_v58 }
 0x546   :  { %v629_v7 = vsel %vm376_vm11, %v624_v6, -inf }
 0x547   :  { %630 = vmax.xlane.f32.xlu1 %v629_v7 }
 0x54b   :  { %v775_v49 = vpop.f32.mrf.mxu2 }
 0x553   :  { %v778_v57 = vpop.f32.mrf.mxu2 }
 0x5ac   :  { %v628_v8 = vpop.xlane.xlu2 %627 }
 0x5ad   :  { %v632_v9 = vsub.f32 %v598_v3, %v628_v8 }
 0x5af   :  { %v634_v10 = vmul.f32 1.442695, %v632_v9  ;;  %v847_v9 = vld [vmem:[%s2870_s17 + $0x10] sm:$0xff] }
 0x5b1   :  { %2053 = vpow2.f32 %v634_v10  ;;  %v846_v10 = vld [vmem:[%s2870_s17 + $0x8] sm:$0xff] }
 0x5b7   :  { %v2054_v11 = vpop.eup %2053 }
 0x5b8   :  { %v638_v12 = vsel %vm376_vm11, %v2054_v11, 0.0 }
 0x5b9   :  { %639 = vadd.xlane.f32.xlu2 %v638_v12 }
 0x5ba   :  { %v631_v13 = vpop.xlane.xlu1 %630 }
 0x5bb   :  { %v633_v14 = vsub.f32 %v624_v6, %v631_v13 }
 0x5bd   :  { %v636_v15 = vmul.f32 1.442695, %v633_v14 }
 0x5bf   :  { %2055 = vpow2.f32 %v636_v15 }
 0x5c5   :  { %v2056_v16 = vpop.eup %2055 }
 0x5c6   :  { %v641_v17 = vsel %vm376_vm11, %v2056_v16, 0.0 }
 0x5c7   :  { %642 = vadd.xlane.f32.xlu1 %v641_v17 }
 0x62c   :  { %v640_v18 = vpop.xlane.xlu2 %639 }
 0x62d   :  { %2057 = vrcp.f32 %v640_v18  ;;  %v655_v24 = vand.u32 2147483648, %v640_v18  ;;  %v653_v27 = vand.u32 2147483647, %v640_v18  ;;  %vm649_vm6 = vweird.f32 %v640_v18 }
 0x62f   :  { %v656_v30 = vor.u32 1.1754944e-38, %v655_v24  ;;  %vm654_vm8 = vcmp.eq.f32.partialorder %v653_v27, 8.507059e+37 }
 0x633   :  { %v2058_v20 = vpop.eup %2057 }
 0x634   :  { %v645_v22 = vmul.f32 %v2058_v20, %v640_v18  ;;  %vm650_vm5 = vweird.f32 %v2058_v20 }
 0x635   :  { %vm651_vm7 = vmor %vm649_vm6, %vm650_vm5  ;;  %vm912_vm6 = vcmask 523264  }
 0x636   :  { %v646_v23 = vsub.f32 1.0, %v645_v22 }
 0x638   :  { %v647_v25 = vmul.f32 %v2058_v20, %v646_v23 }
 0x63a   :  { %v648_v28 = vadd.f32 %v2058_v20, %v647_v25  ;;  %v643_v29 = vpop.xlane.xlu1 %642 }
 0x63b   :  { %2059 = vrcp.f32 %v643_v29  ;;  %v670_v37 = vand.u32 2147483648, %v643_v29  ;;  %v668_v39 = vand.u32 2147483647, %v643_v29  ;;  %vm664_vm12 = vweird.f32 %v643_v29 }
 0x63c   :  { %v652_v31 = vsel %vm651_vm7, %v2058_v20, %v648_v28  ;;  %v2018_v28 = vld [vmem:[%s2867_s15] ss:$0 sm:$0xff] }
 0x63d   :  { %v657_v32 = vsel %vm654_vm8, %v656_v30, %v652_v31  ;;  %v671_v42 = vor.u32 1.1754944e-38, %v670_v37  ;;  %vm669_vm14 = vcmp.eq.f32.partialorder %v668_v39, 8.507059e+37 }
 0x63e   :  { %v658_v33 = vmul.f32 %v2054_v11, %v657_v32  ;;  %v845_v11 = vld [vmem:[%s2870_s17] sm:$0xff] }
 0x63f   :  { %v2019_v32 = vld [vmem:[%s2868_s16] ss:$0 sm:$0xff] }
 0x640   :  { %1905 = vmatmul.msk.f32.vlgmr.msrb.gmra.mxu3 %vm376_vm11, %v658_v33 }
 0x641   :  { %v2060_v34 = vpop.eup %2059 }
 0x642   :  { %v660_v35 = vmul.f32 %v2060_v34, %v643_v29  ;;  %vm665_vm9 = vweird.f32 %v2060_v34 }
 0x643   :  { %vm666_vm13 = vmor %vm664_vm12, %vm665_vm9 }
 0x644   :  { %v661_v36 = vsub.f32 1.0, %v660_v35 }
 0x646   :  { %v662_v38 = vmul.f32 %v2060_v34, %v661_v36 }
 0x648   :  { %v663_v41 = vadd.f32 %v2060_v34, %v662_v38 }
 0x64a   :  { %v667_v43 = vsel %vm666_vm13, %v2060_v34, %v663_v41 }
 0x64b   :  { %v672_v44 = vsel %vm669_vm14, %v671_v42, %v667_v43  ;;  %v907_v43 = vld [vmem:[%s2872_s19 + $0x38] sm:$0xff] }
 0x64c   :  { %v673_v45 = vmul.f32 %v2056_v16, %v672_v44  ;;  %927 = vmatpush.msrb.mxu0 %v907_v43  ;;  %v906_v44 = vld [vmem:[%s2872_s19 + $0x30] sm:$0xff]  ;;  %v1931_v43 = vld [vmem:[%s2906_s29 + $0x40] sm:$0xff] }
 0x64e   :  { %1906 = vmatmul.msk.f32.vlgmr.msra.gmra.mxu0 %vm376_vm11, %v673_v45  ;;  %v905_v45 = vld [vmem:[%s2872_s19 + $0x28] sm:$0xff] }
 0x64f   :  { %928 = vmatpush.msrb.mxu0 %v906_v44 }
 0x651   :  { %929 = vmatpush.msrb.mxu0 %v905_v45 }
 0x653   :  { %930 = vmatpush.msrb.mxu0 %v904_v46 }
 0x6c3   :  { %v694_v47 = vpop.f32.mrf.mxu3 }
 0x6c4   :  { %1909 = vmatmul.msk.f32.vlgmr.msra.gmra.mxu1 %vm323_vm10, %v694_v47  ;;  %v903_v47 = vld [vmem:[%s2872_s19 + $0x18] sm:$0xff] }
 0x6c5   :  { %931 = vmatpush.msrb.mxu0 %v903_v47 }
 0x6cb   :  { %v717_v48 = vpop.f32.mrf.mxu0 }
 0x6cc   :  { %1910 = vmatmul.msk.f32.gmra.mxu1 %vm323_vm10, %v717_v48  ;;  %v902_v48 = vld [vmem:[%s2872_s19 + $0x10] sm:$0xff] }
 0x6cd   :  { %932 = vmatpush.msrb.mxu0 %v902_v48 }
 0x741   :  { %v746_v51 = vpop.f32.mrf.mxu1 }
 0x742   :  { %v776_v52 = vadd.f32 %v775_v49, %v746_v51  ;;  %v901_v49 = vld [vmem:[%s2872_s19 + $0x8] sm:$0xff]  ;;  %v2020_v51 = vld [vmem:[%s2869_s18] ss:$0 sm:$0xff] }
 0x743   :  { %933 = vmatpush.msrb.mxu0 %v901_v49 }
 0x744   :  { %v785_v54 = vadd.f32 %v2017_v50, %v776_v52 }
 0x746   :  { %v787_v55 = vadd.f32 %v785_v54, %v2362_v21 }
 0x748   :  { %v791_v56 = vsel %vm150_vm2, %v787_v55, 0.0 }
 0x749   :  { %792 = vadd.xlane.f32.xlu2 %v791_v56  ;;  %v749_v59 = vpop.f32.mrf.mxu1 }
 0x74a   :  { %v779_v60 = vadd.f32 %v778_v57, %v749_v59 }
 0x74c   :  { %v786_v61 = vadd.f32 %v2017_v50, %v779_v60  ;;  %v900_v50 = vld [vmem:[%s2872_s19] sm:$0xff] }
 0x74d   :  { %934 = vmatpush.msrb.mxu0 %v900_v50 }
 0x74e   :  { %v788_v62 = vadd.f32 %v786_v61, %v2371_v26  ;;  %v848_v26 = vld [vmem:[%s2870_s17 + $0x18] sm:$0xff] }
 0x74f   :  { %871 = vmatpush.msra.mxu3 %v848_v26 }
 0x750   :  { %v794_v63 = vsel %vm150_vm2, %v788_v62, 0.0 }
 0x751   :  { %795 = vadd.xlane.f32.xlu1 %v794_v63  ;;  %872 = vmatpush.msra.mxu3 %v847_v9 }
 0x753   :  { %873 = vmatpush.msra.mxu3 %v846_v10  ;;  %v2021_v10 = vld [vmem:[%s2871_s20] ss:$0 sm:$0xff] }
 0x755   :  { %874 = vmatpush.msra.mxu3 %v845_v11 }
 0x7bc   :  { %v793_v0 = vpop.xlane.xlu2 %792 }
 0x7bd   :  { %v797_v1 = vmul.f32 %v793_v0, %v2308_v40 }
 0x7bf   :  { %v799_v2 = vsub.f32 %v787_v55, %v797_v1 }
 0x7c1   :  { %v801_v3 = vmul.f32 %v799_v2, %v799_v2 }
 0x7c3   :  { %v803_v4 = vsel %vm150_vm2, %v801_v3, 0.0 }
 0x7c4   :  { %804 = vadd.xlane.f32.xlu2 %v803_v4  ;;  %v796_v21 = vpop.xlane.xlu1 %795 }
 0x7c5   :  { %v798_v5 = vmul.f32 %v796_v21, %v2308_v40 }
 0x7c7   :  { %v800_v6 = vsub.f32 %v788_v62, %v798_v5 }
 0x7c9   :  { %v802_v7 = vmul.f32 %v800_v6, %v800_v6 }
 0x7cb   :  { %v806_v8 = vsel %vm150_vm2, %v802_v7, 0.0 }
 0x7cc   :  { %807 = vadd.xlane.f32.xlu1 %v806_v8 }
 0x837   :  { %v805_v12 = vpop.xlane.xlu2 %804 }
 0x838   :  { %v809_v13 = vmul.f32 %v805_v12, %v2308_v40 }
 0x83a   :  { %v811_v14 = vadd.f32 1e-12, %v809_v13 }
 0x83c   :  { %2061 = vrsqrt.f32 %v811_v14  ;;  %vm819_vm0 = vweird.f32 %v811_v14 }
 0x83f   :  { %v808_v15 = vpop.xlane.xlu1 %807 }
 0x840   :  { %v810_v16 = vmul.f32 %v808_v15, %v2308_v40 }
 0x842   :  { %v2062_v17 = vpop.eup %2061  ;;  %v812_v18 = vadd.f32 1e-12, %v810_v16 }
 0x843   :  { %v814_v19 = vmul.f32 %v2062_v17, %v811_v14  ;;  %vm820_vm15 = vweird.f32 %v2062_v17 }
 0x844   :  { %2063 = vrsqrt.f32 %v812_v18  ;;  %vm821_vm1 = vmor %vm819_vm0, %vm820_vm15  ;;  %vm829_vm4 = vweird.f32 %v812_v18 }
 0x845   :  { %v815_v20 = vmul.f32 %v2062_v17, %v814_v19 }
 0x847   :  { %v816_v22 = vmul.f32 0.5, %v815_v20 }
 0x849   :  { %v817_v23 = vsub.f32 1.5, %v816_v22 }
 0x84a   :  { %v2064_v24 = vpop.eup %2063 }
 0x84b   :  { %v818_v25 = vmul.f32 %v2062_v17, %v817_v23  ;;  %v824_v27 = vmul.f32 %v2064_v24, %v812_v18  ;;  %vm830_vm3 = vweird.f32 %v2064_v24 }
 0x84c   :  { %vm831_vm5 = vmor %vm829_vm4, %vm830_vm3 }
 0x84d   :  { %v822_v29 = vsel %vm821_vm1, %v2062_v17, %v818_v25  ;;  %v825_v30 = vmul.f32 %v2064_v24, %v824_v27 }
 0x84e   :  { %v833_v31 = vmul.f32 %v822_v29, %v799_v2 }
 0x84f   :  { %v826_v33 = vmul.f32 0.5, %v825_v30 }
 0x850   :  { %v838_v34 = vmul.f32 %v2018_v28, %v833_v31  ;;  %v1920_v31 = vld [vmem:[%s2904_s30 + $0x58] sm:$0xff] }
 0x851   :  { %v827_v35 = vsub.f32 1.5, %v826_v33  ;;  %v1934_v33 = vld [vmem:[%s2906_s29 + $0x58] sm:$0xff]  ;;  %1028 = vmatpush.msrb.mxu1 %v1920_v31 }
 0x852   :  { %v843_v36 = vadd.f32 %v2019_v32, %v838_v34  ;;  %1096 = vmatpush.msrb.mxu3 %v1934_v33  ;;  %v1919_v34 = vld [vmem:[%s2904_s30 + $0x50] sm:$0xff]  ;;  %v1954_v33 = vld [vmem:[%s2905_s0 + $0x68] sm:$0xff] }
 0x853   :  { %v828_v37 = vmul.f32 %v2064_v24, %v827_v35  ;;  %v1926_v35 = vld [vmem:[%s2905_s0 + $0x50] sm:$0xff]  ;;  %1029 = vmatpush.msrb.mxu1 %v1919_v34  ;;  %v1953_v34 = vld [vmem:[%s2905_s0 + $0x60] sm:$0xff] }
 0x854   :  { %1913 = vmatmul.msk.f32.vlgmr.msra.gmra.mxu3 %vm150_vm2, %v843_v36 }
 0x855   :  { %v832_v38 = vsel %vm831_vm5, %v2064_v24, %v828_v37  ;;  %v1918_v37 = vld [vmem:[%s2904_s30 + $0x48] sm:$0xff] }
 0x856   :  { %v834_v39 = vmul.f32 %v832_v38, %v800_v6  ;;  %v1925_v38 = vld [vmem:[%s2905_s0 + $0x48] sm:$0xff]  ;;  %1030 = vmatpush.msrb.mxu1 %v1918_v37 }
 0x858   :  { %v839_v41 = vmul.f32 %v2018_v28, %v834_v39  ;;  %v1932_v39 = vld [vmem:[%s2906_s29 + $0x48] sm:$0xff] }
 0x85a   :  { %v844_v42 = vadd.f32 %v2019_v32, %v839_v41  ;;  %v1927_v32 = vld [vmem:[%s2905_s0 + $0x58] sm:$0xff]  ;;  %v1917_v41 = vld [vmem:[%s2904_s30 + $0x40] sm:$0xff] }
 0x85b   :  { %1063 = vmatpush.msrb.mxu2 %v1927_v32  ;;  %1031 = vmatpush.msrb.mxu1 %v1917_v41  ;;  %v1955_v32 = vld [vmem:[%s2905_s0 + $0x70] sm:$0xff] }
 0x85c   :  { %1914 = vmatmul.msk.f32.gmra.mxu3 %vm150_vm2, %v844_v42 }
 0x85d   :  { %1064 = vmatpush.msrb.mxu2 %v1926_v35 }
 0x85f   :  { %1065 = vmatpush.msrb.mxu2 %v1925_v38 }
 0x8d7   :  { %v876_v52 = vpop.f32.mrf.mxu3 }
 0x8d8   :  { %v877_v54 = vadd.f32 %v2020_v51, %v876_v52 }
 0x8da   :  { %v882_v55 = vmul.f32 %v877_v54, %v877_v54 }
 0x8dc   :  { %v884_v56 = vmul.f32 %v882_v55, %v877_v54 }
 0x8de   :  { %v886_v57 = vmul.f32 0.044715, %v884_v56 }
 0x8df   :  { %v879_v59 = vpop.f32.mrf.mxu3 }
 0x8e0   :  { %v888_v60 = vadd.f32 %v886_v57, %v877_v54  ;;  %v880_v61 = vadd.f32 %v2020_v51, %v879_v59 }
 0x8e2   :  { %v890_v62 = vmul.f32 0.7978846, %v888_v60  ;;  %v883_v63 = vmul.f32 %v880_v61, %v880_v61  ;;  %v2022_v60 = vld [vmem:[%s2873_s21] ss:$0 sm:$0xff] }
 0x8e4   :  { %2065 = vtanh.f32 %v890_v62  ;;  %v885_v0 = vmul.f32 %v883_v63, %v880_v61  ;;  %v2023_v63 = vld [vmem:[%s2874_s22] ss:$0 sm:$0xff] }
 0x8e6   :  { %v887_v1 = vmul.f32 0.044715, %v885_v0 }
 0x8e8   :  { %v889_v2 = vadd.f32 %v887_v1, %v880_v61 }
 0x8ea   :  { %v2066_v3 = vpop.eup %2065  ;;  %v891_v4 = vmul.f32 0.7978846, %v889_v2 }
 0x8eb   :  { %v894_v21 = vadd.f32 1.0, %v2066_v3 }
 0x8ec   :  { %2067 = vtanh.f32 %v891_v4 }
 0x8ed   :  { %v896_v5 = vmul.f32 0.5, %v894_v21 }
 0x8ef   :  { %v898_v6 = vmul.f32 %v896_v5, %v877_v54 }
 0x8f1   :  { %1915 = vmatmul.msk.f32.vlgmr.msrb.gmra.mxu0 %vm912_vm6, %v898_v6 }
 0x8f2   :  { %v2068_v7 = vpop.eup %2067 }
 0x8f3   :  { %v895_v8 = vadd.f32 1.0, %v2068_v7 }
 0x8f5   :  { %v897_v26 = vmul.f32 0.5, %v895_v8 }
 0x8f7   :  { %v899_v9 = vmul.f32 %v897_v26, %v880_v61 }
 0x8f9   :  { %1916 = vmatmul.msk.f32.gmra.mxu0 %vm912_vm6, %v899_v9  ;;  %v2024_v9 = vld [vmem:[%s2909_s12 + $0x2] ss:$0 sm:$0xff] }
 0x96e   :  { %v936_v11 = vpop.f32.mrf.mxu0 }
 0x96f   :  { %v937_v12 = vadd.f32 %v2021_v10, %v936_v11  ;;  %v2026_v11 = vld [vmem:[%s2911_s11 + $0x2] ss:$0 sm:$0xff] }
 0x971   :  { %v942_v13 = vadd.f32 %v937_v12, %v843_v36  ;;  %v1933_v36 = vld [vmem:[%s2906_s29 + $0x50] sm:$0xff] }
 0x972   :  { %1097 = vmatpush.msrb.mxu3 %v1933_v36 }
 0x973   :  { %v946_v14 = vsel %vm150_vm2, %v942_v13, 0.0 }
 0x974   :  { %947 = vadd.xlane.f32.xlu2 %v946_v14  ;;  %1098 = vmatpush.msrb.mxu3 %v1932_v39 }
 0x976   :  { %v939_v15 = vpop.f32.mrf.mxu0  ;;  %1099 = vmatpush.msrb.mxu3 %v1931_v43 }
 0x977   :  { %v940_v16 = vadd.f32 %v2021_v10, %v939_v15  ;;  %v2025_v10 = vld [vmem:[%s2910_s7 + $0x2] ss:$0 sm:$0xff] }
 0x979   :  { %v943_v17 = vadd.f32 %v940_v16, %v844_v42  ;;  %v1924_v42 = vld [vmem:[%s2905_s0 + $0x40] sm:$0xff]  ;;  %v1949_v16 = vld [vmem:[%s2904_s30 + $0x78] sm:$0xff] }
 0x97a   :  { %1066 = vmatpush.msrb.mxu2 %v1924_v42  ;;  %v2680_v42 = vld [vmem:[%s2910_s7 + $0x3] ss:$0 sm:$0xff] }
 0x97b   :  { %v949_v18 = vsel %vm150_vm2, %v943_v17, 0.0 }
 0x97c   :  { %950 = vadd.xlane.f32.xlu0 %v949_v18 }
 0x9e7   :  { %v948_v19 = vpop.xlane.xlu2 %947 }
 0x9e8   :  { %v952_v20 = vmul.f32 %v948_v19, %v2308_v40  ;;  %v1948_v19 = vld [vmem:[%s2904_s30 + $0x70] sm:$0xff] }
 0x9ea   :  { %v954_v22 = vsub.f32 %v942_v13, %v952_v20 }
 0x9ec   :  { %v956_v23 = vmul.f32 %v954_v22, %v954_v22 }
 0x9ee   :  { %v958_v24 = vsel %vm150_vm2, %v956_v23, 0.0 }
 0x9ef   :  { %959 = vadd.xlane.f32.xlu1 %v958_v24  ;;  %v951_v25 = vpop.xlane.xlu0 %950 }
 0x9f0   :  { %v953_v27 = vmul.f32 %v951_v25, %v2308_v40  ;;  %v1946_v25 = vld [vmem:[%s2904_s30 + $0x60] sm:$0xff] }
 0x9f2   :  { %v2562_v28 = vsub.f32 %v943_v17, %v953_v27 }
 0x9f4   :  { %v957_v29 = vmul.f32 %v2562_v28, %v2562_v28 }
 0x9f6   :  { %v961_v30 = vsel %vm150_vm2, %v957_v29, 0.0  ;;  %v1956_v29 = vld [vmem:[%s2905_s0 + $0x78] sm:$0xff] }
 0x9f7   :  { %962 = vadd.xlane.f32.xlu2 %v961_v30 }
 0xa62   :  { %v960_v44 = vpop.xlane.xlu1 %959 }
 0xa63   :  { %v964_v45 = vmul.f32 %v960_v44, %v2308_v40 }
 0xa65   :  { %v966_v46 = vadd.f32 1e-12, %v964_v45 }
 0xa67   :  { %2069 = vrsqrt.f32 %v966_v46  ;;  %vm974_vm8 = vweird.f32 %v966_v46 }
 0xa6a   :  { %v963_v47 = vpop.xlane.xlu2 %962 }
 0xa6b   :  { %v965_v48 = vmul.f32 %v963_v47, %v2308_v40 }
 0xa6d   :  { %v2070_v49 = vpop.eup %2069  ;;  %v967_v50 = vadd.f32 1e-12, %v965_v48 }
 0xa6e   :  { %v969_v51 = vmul.f32 %v2070_v49, %v966_v46  ;;  %vm975_vm7 = vweird.f32 %v2070_v49 }
 0xa6f   :  { %2071 = vrsqrt.f32 %v967_v50  ;;  %vm976_vm9 = vmor %vm974_vm8, %vm975_vm7  ;;  %vm984_vm13 = vweird.f32 %v967_v50 }
 0xa70   :  { %v970_v52 = vmul.f32 %v2070_v49, %v969_v51 }
 0xa72   :  { %v971_v54 = vmul.f32 0.5, %v970_v52 }
 0xa74   :  { %v972_v55 = vsub.f32 1.5, %v971_v54 }
 0xa75   :  { %v2072_v56 = vpop.eup %2071 }
 0xa76   :  { %v973_v57 = vmul.f32 %v2070_v49, %v972_v55  ;;  %v979_v59 = vmul.f32 %v2072_v56, %v967_v50  ;;  %vm985_vm12 = vweird.f32 %v2072_v56 }
 0xa77   :  { %vm986_vm14 = vmor %vm984_vm13, %vm985_vm12 }
 0xa78   :  { %v977_v61 = vsel %vm976_vm9, %v2070_v49, %v973_v57  ;;  %v980_v62 = vmul.f32 %v2072_v56, %v979_v59  ;;  %v1962_v57 = vld [vmem:[%s2906_s29 + $0x70] sm:$0xff]  ;;  %v1961_v59 = vld [vmem:[%s2906_s29 + $0x68] sm:$0xff] }
 0xa79   :  { %v988_v0 = vmul.f32 %v977_v61, %v954_v22  ;;  %v1947_v22 = vld [vmem:[%s2904_s30 + $0x68] sm:$0xff] }
 0xa7a   :  { %v981_v1 = vmul.f32 0.5, %v980_v62 }
 0xa7b   :  { %v993_v2 = vmul.f32 %v2022_v60, %v988_v0 }
 0xa7c   :  { %v982_v3 = vsub.f32 1.5, %v981_v1 }
 0xa7d   :  { %v2611_v4 = vadd.f32 %v2023_v63, %v993_v2 }
 0xa7e   :  { %v983_v21 = vmul.f32 %v2072_v56, %v982_v3 }
 0xa7f   :  { %1922 = vmatmul.msk.f32.vlgmr.msrb.gmra.mxu1 %vm150_vm2, %v2611_v4  ;;  %1929 = vmatmul.msk.f32.vlgmr.msrb.gmra.mxu2 %vm150_vm2, %v2611_v4 }
 0xa80   :  { %v987_v5 = vsel %vm986_vm14, %v2072_v56, %v983_v21  ;;  %1936 = vmatmul.msk.f32.vlgmr.msrb.gmra.mxu3 %vm150_vm2, %v2611_v4  ;;  %v1963_v56 = vld [vmem:[%s2906_s29 + $0x78] sm:$0xff] }
 0xa81   :  { %v989_v6 = vmul.f32 %v987_v5, %v2562_v28 }
 0xa83   :  { %v994_v7 = vmul.f32 %v2022_v60, %v989_v6  ;;  %v1960_v60 = vld [vmem:[%s2906_s29 + $0x60] sm:$0xff] }
 0xa85   :  { %v2620_v8 = vadd.f32 %v2023_v63, %v994_v7 }
 0xa87   :  { %1923 = vmatmul.msk.f32.gmra.mxu1 %vm150_vm2, %v2620_v8  ;;  %1930 = vmatmul.msk.f32.gmra.mxu2 %vm150_vm2, %v2620_v8 }
 0xa88   :  { %1937 = vmatmul.msk.f32.gmra.mxu3 %vm150_vm2, %v2620_v8 }
 0xafc   :  { %v1033_v26 = vpop.f32.mrf.mxu1 }
 0xafd   :  { %v1034_v12 = vadd.f32 %v2024_v9, %v1033_v26 }
 0xaff   :  { %v1039_v18 = vmul.f32 0.25, %v1034_v12 }
 0xb02   :  { %v1068_v13 = vpop.f32.mrf.mxu2 }
 0xb03   :  { %v1069_v14 = vadd.f32 %v2025_v10, %v1068_v13  ;;  %v1101_v15 = vpop.f32.mrf.mxu3 }
 0xb04   :  { %v1102_v17 = vadd.f32 %v2026_v11, %v1101_v15  ;;  %v1036_v20 = vpop.f32.mrf.mxu1 }
 0xb05   :  { %1938 = vmatpush.xpose.msk.msra.mxu0 %vm323_vm10, %v1069_v14  ;;  %v1037_v23 = vadd.f32 %v2024_v9, %v1036_v20 }
 0xb06   :  { %1225 = vmatpush.msra.mxu2 %v1102_v17 }
 0xb07   :  { %v1040_v31 = vmul.f32 0.25, %v1037_v23  ;;  %v2027_v23 = vld [vmem:[%s2909_s12 + $0x3] ss:$0 sm:$0xff] }
 0xb08   :  { %1939 = vmatmul.msk.f32.vlgmr.msra.gmra.mxu0 %vm323_vm10, %v1039_v18  ;;  %1346 = vmatpush.msrb.mxu2 %v1963_v56 }
 0xb09   :  { %1278 = vmatpush.msrb.mxu0 %v1949_v16 }
 0xb0a   :  { %v1071_v24 = vpop.f32.mrf.mxu2  ;;  %1347 = vmatpush.msrb.mxu2 %v1962_v57 }
 0xb0b   :  { %1279 = vmatpush.msrb.mxu0 %v1948_v19  ;;  %v1072_v27 = vadd.f32 %v2025_v10, %v1071_v24  ;;  %v1104_v28 = vpop.f32.mrf.mxu3 }
 0xb0c   :  { %v1105_v30 = vadd.f32 %v2026_v11, %v1104_v28  ;;  %1348 = vmatpush.msrb.mxu2 %v1961_v59 }
 0xb0d   :  { %1280 = vmatpush.msrb.mxu0 %v1947_v22  ;;  %1940 = vmatpush.xpose.msk.msra.mxu1 %vm323_vm10, %v1072_v27 }
 0xb0e   :  { %1248 = vmatpush.msra.mxu3 %v1105_v30  ;;  %1349 = vmatpush.msrb.mxu2 %v1960_v60 }
 0xb0f   :  { %1281 = vmatpush.msrb.mxu0 %v1946_v25 }
 0xb10   :  { %1941 = vmatmul.msk.f32.vlgmr.msra.gmra.mxu1 %vm323_vm10, %v1040_v31  ;;  %1951 = vmatmul.msk.f32.vlgmr.msrb.gmra.mxu0 %vm150_vm2, %v2611_v4 }
 0xb11   :  { %1313 = vmatpush.msrb.mxu1 %v1956_v29  ;;  %v1945_v29 = vld [vmem:[%s2865_s13 + $0x28] sm:$0xff] }
 0xb13   :  { %1314 = vmatpush.msrb.mxu1 %v1955_v32 }
 0xb15   :  { %1315 = vmatpush.msrb.mxu1 %v1954_v33  ;;  %v1944_v33 = vld [vmem:[%s2865_s13 + $0x20] sm:$0xff] }
 0xb17   :  { %1316 = vmatpush.msrb.mxu1 %v1953_v34 }
 0xb18   :  { %1952 = vmatmul.msk.f32.gmra.mxu0 %vm150_vm2, %v2620_v8  ;;  %1958 = vmatmul.msk.f32.vlgmr.msrb.gmra.mxu1 %vm150_vm2, %v2611_v4 }
 0xb20   :  { %1959 = vmatmul.msk.f32.gmra.mxu1 %vm150_vm2, %v2620_v8 }
 0xb85   :  { %v1130_v35 = vpop.f32.mrf.mxu0 }
 0xb86   :  { %v1131_v36 = vadd.f32 %v1130_v35, %v2411_v53  ;;  %v2029_v35 = vld [vmem:[%s2911_s11 + $0x3] ss:$0 sm:$0xff] }
 0xb88   :  { %v1159_v37 = vsel %vm376_vm11, %v1131_v36, -inf }
 0xb89   :  { %1160 = vmax.xlane.f32.xlu2 %v1159_v37 }
 0xb8d   :  { %v1156_v38 = vpop.f32.mrf.mxu1  ;;  %v1283_v20 = vpop.f32.mrf.mxu0 }
 0xb8e   :  { %v1157_v39 = vadd.f32 %v1156_v38, %v2415_v58  ;;  %v1284_v27 = vadd.f32 %v2027_v23, %v1283_v20 }
 0xb90   :  { %v1162_v41 = vsel %vm376_vm11, %v1157_v39, -inf  ;;  %v1289_v28 = vmul.f32 0.25, %v1284_v27 }
 0xb91   :  { %1163 = vmax.xlane.f32.xlu0 %v1162_v41 }
 0xb95   :  { %v1318_v43 = vpop.f32.mrf.mxu1  ;;  %v1286_v30 = vpop.f32.mrf.mxu0 }
 0xb96   :  { %v1319_v44 = vadd.f32 %v2680_v42, %v1318_v43  ;;  %v1287_v31 = vadd.f32 %v2027_v23, %v1286_v30 }
 0xb98   :  { %1967 = vmatpush.xpose.msk.msrb.mxu3 %vm323_vm10, %v1319_v44  ;;  %v1290_v32 = vmul.f32 0.25, %v1287_v31 }
 0xb9d   :  { %v1321_v18 = vpop.f32.mrf.mxu1 }
 0xb9e   :  { %v1322_v25 = vadd.f32 %v2680_v42, %v1321_v18 }
 0xbfc   :  { %v1161_v45 = vpop.xlane.xlu2 %1160 }
 0xbfd   :  { %v1165_v46 = vsub.f32 %v1131_v36, %v1161_v45 }
 0xbff   :  { %v1167_v47 = vmul.f32 1.442695, %v1165_v46 }
 0xc01   :  { %2073 = vpow2.f32 %v1167_v47 }
 0xc04   :  { %v1164_v48 = vpop.xlane.xlu0 %1163 }
 0xc05   :  { %v1166_v49 = vsub.f32 %v1157_v39, %v1164_v48 }
 0xc07   :  { %v2074_v50 = vpop.eup %2073  ;;  %v1169_v51 = vmul.f32 1.442695, %v1166_v49 }
 0xc08   :  { %v1171_v52 = vsel %vm376_vm11, %v2074_v50, 0.0 }
 0xc09   :  { %2075 = vpow2.f32 %v1169_v51  ;;  %1172 = vadd.xlane.f32.xlu0 %v1171_v52 }
 0xc0f   :  { %v2076_v54 = vpop.eup %2075 }
 0xc10   :  { %v1174_v55 = vsel %vm376_vm11, %v2076_v54, 0.0 }
 0xc11   :  { %1175 = vadd.xlane.f32.xlu1 %v1174_v55 }
 0xc7c   :  { %v1173_v61 = vpop.xlane.xlu0 %1172 }
 0xc7d   :  { %2077 = vrcp.f32 %v1173_v61  ;;  %v1188_v2 = vand.u32 2147483648, %v1173_v61  ;;  %v1186_v21 = vand.u32 2147483647, %v1173_v61  ;;  %vm1182_vm0 = vweird.f32 %v1173_v61 }
 0xc7f   :  { %v1189_v7 = vor.u32 1.1754944e-38, %v1188_v2  ;;  %vm1187_vm3 = vcmp.eq.f32.partialorder %v1186_v21, 8.507059e+37 }
 0xc83   :  { %v2078_v62 = vpop.eup %2077 }
 0xc84   :  { %v1178_v63 = vmul.f32 %v2078_v62, %v1173_v61  ;;  %v1176_v0 = vpop.xlane.xlu1 %1175  ;;  %vm1183_vm15 = vweird.f32 %v2078_v62 }
 0xc85   :  { %2079 = vrcp.f32 %v1176_v0  ;;  %vm1184_vm1 = vmor %vm1182_vm0, %vm1183_vm15  ;;  %v1203_v13 = vand.u32 2147483648, %v1176_v0  ;;  %v1201_v15 = vand.u32 2147483647, %v1176_v0  ;;  %vm1197_vm5 = vweird.f32 %v1176_v0 }
 0xc86   :  { %v1179_v1 = vsub.f32 1.0, %v1178_v63 }
 0xc87   :  { %v1204_v17 = vor.u32 1.1754944e-38, %v1203_v13  ;;  %vm1202_vm8 = vcmp.eq.f32.partialorder %v1201_v15, 8.507059e+37 }
 0xc88   :  { %v1180_v3 = vmul.f32 %v2078_v62, %v1179_v1 }
 0xc8a   :  { %v1181_v5 = vadd.f32 %v2078_v62, %v1180_v3 }
 0xc8b   :  { %v2080_v6 = vpop.eup %2079 }
 0xc8c   :  { %v1185_v26 = vsel %vm1184_vm1, %v2078_v62, %v1181_v5  ;;  %v1193_v9 = vmul.f32 %v2080_v6, %v1176_v0  ;;  %vm1198_vm4 = vweird.f32 %v2080_v6 }
 0xc8d   :  { %v1190_v10 = vsel %vm1187_vm3, %v1189_v7, %v1185_v26  ;;  %vm1199_vm7 = vmor %vm1197_vm5, %vm1198_vm4 }
 0xc8e   :  { %v1194_v11 = vsub.f32 1.0, %v1193_v9  ;;  %v1191_v12 = vmul.f32 %v2074_v50, %v1190_v10 }
 0xc90   :  { %v1195_v14 = vmul.f32 %v2080_v6, %v1194_v11  ;;  %1942 = vmatmul.msk.f32.vlgmr.msra.gmra.mxu2 %vm376_vm11, %v1191_v12 }
 0xc92   :  { %v1196_v16 = vadd.f32 %v2080_v6, %v1195_v14 }
 0xc94   :  { %v1200_v19 = vsel %vm1199_vm7, %v2080_v6, %v1196_v16 }
 0xc95   :  { %v1205_v22 = vsel %vm1202_vm8, %v1204_v17, %v1200_v19  ;;  %v1973_v19 = vld [vmem:[%s2865_s13 + $0x30] sm:$0xff] }
 0xc96   :  { %v1206_v24 = vmul.f32 %v2076_v54, %v1205_v22 }
 0xc98   :  { %1943 = vmatmul.msk.f32.vlgmr.msra.gmra.mxu3 %vm376_vm11, %v1206_v24  ;;  %1965 = vmatmul.msk.f32.vlgmr.msrb.gmra.mxu2 %vm150_vm2, %v2611_v4  ;;  %v2030_v24 = vld [vmem:[%s2866_s14 + $0x1] ss:$0 sm:$0xff] }
 0xc99   :  { %1969 = vmatpush.xpose.msk.msra.mxu3 %vm323_vm10, %v1322_v25 }
 0xca0   :  { %1966 = vmatmul.msk.f32.gmra.mxu2 %vm150_vm2, %v2620_v8  ;;  %1968 = vmatmul.msk.f32.vlgmr.msrb.gmra.mxu3 %vm323_vm10, %v1289_v28 }
 0xca1   :  { %1555 = vmatpush.msrb.mxu3 %v1945_v29 }
 0xca3   :  { %1556 = vmatpush.msrb.mxu3 %v1944_v33 }
 0xca8   :  { %1970 = vmatmul.msk.f32.vlgmr.msra.gmra.mxu3 %vm323_vm10, %v1290_v32 }
 0xd13   :  { %v1227_v34 = vpop.f32.mrf.mxu2 }
 0xd14   :  { %1977 = vmatmul.msk.f32.vlgmr.msrb.gmra.mxu3 %vm323_vm10, %v1227_v34 }
 0xd1b   :  { %v1250_v36 = vpop.f32.mrf.mxu3  ;;  %v1351_v37 = vpop.f32.mrf.mxu2 }
 0xd1c   :  { %v1352_v38 = vadd.f32 %v2029_v35, %v1351_v37  ;;  %1978 = vmatmul.msk.f32.gmra.mxu3 %vm323_vm10, %v1250_v36 }
 0xd1e   :  { %1475 = vmatpush.msra.mxu0 %v1352_v38 }
 0xd23   :  { %v1354_v39 = vpop.f32.mrf.mxu2  ;;  %v1380_v41 = vpop.f32.mrf.mxu3 }
 0xd24   :  { %v1355_v42 = vadd.f32 %v2029_v35, %v1354_v39  ;;  %v1381_v43 = vadd.f32 %v1380_v41, %v2411_v53 }
 0xd26   :  { %1498 = vmatpush.msra.mxu1 %v1355_v42  ;;  %v1409_v44 = vsel %vm376_vm11, %v1381_v43, -inf }
 0xd27   :  { %1410 = vmax.xlane.f32.xlu1 %v1409_v44 }
 0xd2b   :  { %v1406_v45 = vpop.f32.mrf.mxu3 }
 0xd2c   :  { %v1407_v46 = vadd.f32 %v1406_v45, %v2415_v58  ;;  %v1974_v58 = vld [vmem:[%s2865_s13 + $0x38] sm:$0xff] }
 0xd2d   :  { %1526 = vmatpush.msra.mxu2 %v1974_v58 }
 0xd2e   :  { %v1412_v47 = vsel %vm376_vm11, %v1407_v46, -inf }
 0xd2f   :  { %1413 = vmax.xlane.f32.xlu2 %v1412_v47  ;;  %1527 = vmatpush.msra.mxu2 %v1973_v19  ;;  %v1984_v47 = vld [vmem:[%s2870_s17 + $0x30] sm:$0xff] }
 0xd30   :  { %v1991_v19 = vld [vmem:[%s2872_s19 + $0x50] sm:$0xff] }
 0xd97   :  { %v1558_v23 = vpop.f32.mrf.mxu3 }
 0xd9a   :  { %v1411_v48 = vpop.xlane.xlu1 %1410 }
 0xd9b   :  { %v1415_v49 = vsub.f32 %v1381_v43, %v1411_v48  ;;  %v1983_v48 = vld [vmem:[%s2870_s17 + $0x28] sm:$0xff] }
 0xd9d   :  { %v1417_v50 = vmul.f32 1.442695, %v1415_v49  ;;  %v1982_v49 = vld [vmem:[%s2870_s17 + $0x20] sm:$0xff] }
 0xd9f   :  { %2081 = vpow2.f32 %v1417_v50  ;;  %v1561_v31 = vpop.f32.mrf.mxu3 }
 0xda2   :  { %v1414_v51 = vpop.xlane.xlu2 %1413 }
 0xda3   :  { %v1416_v52 = vsub.f32 %v1407_v46, %v1414_v51 }
 0xda5   :  { %v2082_v54 = vpop.eup %2081  ;;  %v1419_v55 = vmul.f32 1.442695, %v1416_v52 }
 0xda6   :  { %v1421_v53 = vsel %vm376_vm11, %v2082_v54, 0.0 }
 0xda7   :  { %2083 = vpow2.f32 %v1419_v55  ;;  %1422 = vadd.xlane.f32.xlu0 %v1421_v53 }
 0xdad   :  { %v2084_v56 = vpop.eup %2083 }
 0xdae   :  { %v1424_v57 = vsel %vm376_vm11, %v2084_v56, 0.0 }
 0xdaf   :  { %1425 = vadd.xlane.f32.xlu1 %v1424_v57 }
 0xe1a   :  { %v1423_v59 = vpop.xlane.xlu0 %1422 }
 0xe1b   :  { %2085 = vrcp.f32 %v1423_v59  ;;  %v1438_v0 = vand.u32 2147483648, %v1423_v59  ;;  %v1436_v2 = vand.u32 2147483647, %v1423_v59  ;;  %vm1432_vm12 = vweird.f32 %v1423_v59 }
 0xe1d   :  { %v1439_v5 = vor.u32 1.1754944e-38, %v1438_v0  ;;  %vm1437_vm14 = vcmp.eq.f32.partialorder %v1436_v2, 8.507059e+37  ;;  %v2031_v0 = vld [vmem:[%s2867_s15 + $0x1] ss:$0 sm:$0xff] }
 0xe21   :  { %v2086_v60 = vpop.eup %2085 }
 0xe22   :  { %v1428_v61 = vmul.f32 %v2086_v60, %v1423_v59  ;;  %v1426_v62 = vpop.xlane.xlu1 %1425  ;;  %vm1433_vm9 = vweird.f32 %v2086_v60 }
 0xe23   :  { %2087 = vrcp.f32 %v1426_v62  ;;  %vm1434_vm13 = vmor %vm1432_vm12, %vm1433_vm9  ;;  %v1453_v11 = vand.u32 2147483648, %v1426_v62  ;;  %v1451_v13 = vand.u32 2147483647, %v1426_v62  ;;  %vm1447_vm0 = vweird.f32 %v1426_v62 }
 0xe24   :  { %v1429_v63 = vsub.f32 1.0, %v1428_v61 }
 0xe25   :  { %v1454_v15 = vor.u32 1.1754944e-38, %v1453_v11  ;;  %vm1452_vm3 = vcmp.eq.f32.partialorder %v1451_v13, 8.507059e+37 }
 0xe26   :  { %v1430_v1 = vmul.f32 %v2086_v60, %v1429_v63 }
 0xe28   :  { %v1431_v3 = vadd.f32 %v2086_v60, %v1430_v1 }
 0xe29   :  { %v2088_v21 = vpop.eup %2087 }
 0xe2a   :  { %v1435_v6 = vsel %vm1434_vm13, %v2086_v60, %v1431_v3  ;;  %v1443_v7 = vmul.f32 %v2088_v21, %v1426_v62  ;;  %vm1448_vm15 = vweird.f32 %v2088_v21 }
 0xe2b   :  { %v1440_v26 = vsel %vm1437_vm14, %v1439_v5, %v1435_v6  ;;  %vm1449_vm1 = vmor %vm1447_vm0, %vm1448_vm15  ;;  %vm1802_vm0 = vcmask 1041409  }
 0xe2c   :  { %v1444_v9 = vsub.f32 1.0, %v1443_v7  ;;  %v1441_v10 = vmul.f32 %v2082_v54, %v1440_v26 }
 0xe2e   :  { %v1445_v12 = vmul.f32 %v2088_v21, %v1444_v9  ;;  %1971 = vmatmul.msk.f32.vlgmr.msra.gmra.mxu0 %vm376_vm11, %v1441_v10 }
 0xe30   :  { %v1446_v14 = vadd.f32 %v2088_v21, %v1445_v12 }
 0xe32   :  { %v1450_v16 = vsel %vm1449_vm1, %v2088_v21, %v1446_v14  ;;  %v2032_v21 = vld [vmem:[%s2868_s16 + $0x1] ss:$0 sm:$0xff]  ;;  %v1996_v14 = vld [vmem:[%s2872_s19 + $0x78] sm:$0xff]  ;;  %vm1858_vm1 = vcmask 33792  }
 0xe33   :  { %v1455_v17 = vsel %vm1452_vm3, %v1454_v15, %v1450_v16  ;;  %1716 = vmatpush.msrb.mxu1 %v1996_v14  ;;  %v1995_v15 = vld [vmem:[%s2872_s19 + $0x70] sm:$0xff]  ;;  %v1994_v16 = vld [vmem:[%s2872_s19 + $0x68] sm:$0xff] }
 0xe34   :  { %v1456_v18 = vmul.f32 %v2084_v56, %v1455_v17  ;;  %v1993_v17 = vld [vmem:[%s2872_s19 + $0x60] sm:$0xff] }
 0xe35   :  { %1717 = vmatpush.msrb.mxu1 %v1995_v15 }
 0xe36   :  { %1972 = vmatmul.msk.f32.vlgmr.msra.gmra.mxu1 %vm376_vm11, %v1456_v18  ;;  %v1992_v18 = vld [vmem:[%s2872_s19 + $0x58] sm:$0xff] }
 0xe37   :  { %1718 = vmatpush.msrb.mxu1 %v1994_v16 }
 0xe39   :  { %1719 = vmatpush.msrb.mxu1 %v1993_v17 }
 0xe3b   :  { %1720 = vmatpush.msrb.mxu1 %v1992_v18 }
 0xe3d   :  { %1721 = vmatpush.msrb.mxu1 %v1991_v19 }
 0xeab   :  { %v1477_v20 = vpop.f32.mrf.mxu0 }
 0xeac   :  { %1975 = vmatmul.msk.f32.vlgmr.msra.gmra.mxu2 %vm323_vm10, %v1477_v20  ;;  %v1990_v20 = vld [vmem:[%s2872_s19 + $0x48] sm:$0xff] }
 0xead   :  { %1722 = vmatpush.msrb.mxu1 %v1990_v20 }
 0xeb3   :  { %v1500_v22 = vpop.f32.mrf.mxu1 }
 0xeb4   :  { %1976 = vmatmul.msk.f32.gmra.mxu2 %vm323_vm10, %v1500_v22  ;;  %v1989_v22 = vld [vmem:[%s2872_s19 + $0x40] sm:$0xff] }
 0xeb5   :  { %1723 = vmatpush.msrb.mxu1 %v1989_v22 }
 0xf2f   :  { %v1529_v25 = vpop.f32.mrf.mxu2 }
 0xf30   :  { %v1559_v27 = vadd.f32 %v1558_v23, %v1529_v25  ;;  %v2033_v23 = vld [vmem:[%s2869_s18 + $0x1] ss:$0 sm:$0xff] }
 0xf32   :  { %v1569_v28 = vadd.f32 %v2030_v24, %v1559_v27 }
 0xf34   :  { %v1571_v29 = vadd.f32 %v1569_v28, %v2611_v4 }
 0xf36   :  { %v1577_v30 = vsel %vm150_vm2, %v1571_v29, 0.0 }
 0xf37   :  { %1578 = vadd.xlane.f32.xlu2 %v1577_v30  ;;  %v1532_v32 = vpop.f32.mrf.mxu2 }
 0xf38   :  { %v1562_v33 = vadd.f32 %v1561_v31, %v1532_v32 }
 0xf3a   :  { %v1570_v34 = vadd.f32 %v2030_v24, %v1562_v33 }
 0xf3c   :  { %v1572_v35 = vadd.f32 %v1570_v34, %v2620_v8  ;;  %v1985_v8 = vld [vmem:[%s2870_s17 + $0x38] sm:$0xff] }
 0xf3d   :  { %1659 = vmatpush.msrb.mxu0 %v1985_v8  ;;  %v2034_v8 = vld [vmem:[%s2871_s20 + $0x1] ss:$0 sm:$0xff] }
 0xf3e   :  { %v1580_v36 = vsel %vm150_vm2, %v1572_v35, 0.0 }
 0xf3f   :  { %1581 = vadd.xlane.f32.xlu0 %v1580_v36  ;;  %1660 = vmatpush.msrb.mxu0 %v1984_v47 }
 0xf41   :  { %1661 = vmatpush.msrb.mxu0 %v1983_v48 }
 0xf43   :  { %1662 = vmatpush.msrb.mxu0 %v1982_v49 }
 0xfaa   :  { %v1579_v37 = vpop.xlane.xlu2 %1578 }
 0xfab   :  { %v1583_v38 = vmul.f32 %v1579_v37, %v2308_v40 }
 0xfad   :  { %v1585_v39 = vsub.f32 %v1571_v29, %v1583_v38 }
 0xfaf   :  { %v1587_v41 = vmul.f32 %v1585_v39, %v1585_v39 }
 0xfb1   :  { %v1589_v42 = vsel %vm150_vm2, %v1587_v41, 0.0 }
 0xfb2   :  { %v1582_v4 = vpop.xlane.xlu0 %1581  ;;  %1590 = vadd.xlane.f32.xlu1 %v1589_v42 }
 0xfb3   :  { %v1584_v43 = vmul.f32 %v1582_v4, %v2308_v40 }
 0xfb5   :  { %v1586_v44 = vsub.f32 %v1572_v35, %v1584_v43 }
 0xfb7   :  { %v1588_v45 = vmul.f32 %v1586_v44, %v1586_v44 }
 0xfb9   :  { %v1592_v46 = vsel %vm150_vm2, %v1588_v45, 0.0 }
 0xfba   :  { %1593 = vadd.xlane.f32.xlu2 %v1592_v46 }
0x1025   :  { %v1591_v50 = vpop.xlane.xlu1 %1590 }
0x1026   :  { %v1595_v51 = vmul.f32 %v1591_v50, %v2308_v40 }
0x1028   :  { %v1597_v52 = vadd.f32 1e-12, %v1595_v51 }
0x102a   :  { %2089 = vrsqrt.f32 %v1597_v52  ;;  %vm1605_vm11 = vweird.f32 %v1597_v52 }
0x102d   :  { %v1594_v54 = vpop.xlane.xlu2 %1593 }
0x102e   :  { %v1596_v55 = vmul.f32 %v1594_v54, %v2308_v40 }
0x1030   :  { %v2090_v53 = vpop.eup %2089  ;;  %v1598_v56 = vadd.f32 1e-12, %v1596_v55 }
0x1031   :  { %v1600_v57 = vmul.f32 %v2090_v53, %v1597_v52  ;;  %vm1606_vm10 = vweird.f32 %v2090_v53 }
0x1032   :  { %2091 = vrsqrt.f32 %v1598_v56  ;;  %vm1607_vm4 = vmor %vm1605_vm11, %vm1606_vm10  ;;  %vm1615_vm7 = vweird.f32 %v1598_v56 }
0x1033   :  { %v1601_v58 = vmul.f32 %v2090_v53, %v1600_v57 }
0x1035   :  { %v1602_v59 = vmul.f32 0.5, %v1601_v58 }
0x1037   :  { %v1603_v60 = vsub.f32 1.5, %v1602_v59 }
0x1038   :  { %v2092_v61 = vpop.eup %2091 }
0x1039   :  { %v1604_v62 = vmul.f32 %v2090_v53, %v1603_v60  ;;  %v1610_v63 = vmul.f32 %v2092_v61, %v1598_v56  ;;  %vm1616_vm5 = vweird.f32 %v2092_v61 }
0x103a   :  { %vm1617_vm8 = vmor %vm1615_vm7, %vm1616_vm5 }
0x103b   :  { %v1608_v1 = vsel %vm1607_vm4, %v2090_v53, %v1604_v62  ;;  %v1611_v2 = vmul.f32 %v2092_v61, %v1610_v63 }
0x103c   :  { %v1619_v3 = vmul.f32 %v1608_v1, %v1585_v39 }
0x103d   :  { %v1612_v5 = vmul.f32 0.5, %v1611_v2 }
0x103e   :  { %v1624_v6 = vmul.f32 %v2031_v0, %v1619_v3  ;;  %v1794_v3 = vld [vmem:[%s2876_s23 + $0x18] sm:$0xff] }
0x103f   :  { %v1613_v7 = vsub.f32 1.5, %v1612_v5  ;;  %1818 = vmatpush.msrb.mxu2 %v1794_v3 }
0x1040   :  { %v1629_v26 = vadd.f32 %v2032_v21, %v1624_v6  ;;  %v1792_v6 = vld [vmem:[%s2876_s23 + $0x8] sm:$0xff] }
0x1041   :  { %v1614_v9 = vmul.f32 %v2092_v61, %v1613_v7  ;;  %v1791_v7 = vld [vmem:[%s2876_s23] sm:$0xff] }
0x1042   :  { %1987 = vmatmul.msk.f32.vlgmr.msrb.gmra.mxu0 %vm150_vm2, %v1629_v26 }
0x1043   :  { %v1618_v10 = vsel %vm1617_vm8, %v2092_v61, %v1614_v9 }
0x1044   :  { %v1620_v11 = vmul.f32 %v1618_v10, %v1586_v44 }
0x1046   :  { %v1625_v12 = vmul.f32 %v2031_v0, %v1620_v11 }
0x1048   :  { %v1630_v13 = vadd.f32 %v2032_v21, %v1625_v12  ;;  %v1793_v21 = vld [vmem:[%s2876_s23 + $0x10] sm:$0xff] }
0x1049   :  { %1819 = vmatpush.msrb.mxu2 %v1793_v21 }
0x104a   :  { %1988 = vmatmul.msk.f32.gmra.mxu0 %vm150_vm2, %v1630_v13 }
0x104b   :  { %1820 = vmatpush.msrb.mxu2 %v1792_v6 }
0x104d   :  { %1821 = vmatpush.msrb.mxu2 %v1791_v7 }
0x10bf   :  { %v1664_v24 = vpop.f32.mrf.mxu0 }
0x10c0   :  { %v1665_v25 = vadd.f32 %v2033_v23, %v1664_v24 }
0x10c2   :  { %v1670_v27 = vmul.f32 %v1665_v25, %v1665_v25 }
0x10c4   :  { %v1672_v28 = vmul.f32 %v1670_v27, %v1665_v25 }
0x10c6   :  { %v1674_v29 = vmul.f32 0.044715, %v1672_v28 }
0x10c7   :  { %v1667_v30 = vpop.f32.mrf.mxu0 }
0x10c8   :  { %v1676_v31 = vadd.f32 %v1674_v29, %v1665_v25  ;;  %v1668_v32 = vadd.f32 %v2033_v23, %v1667_v30 }
0x10ca   :  { %v1678_v33 = vmul.f32 0.7978846, %v1676_v31  ;;  %v1671_v34 = vmul.f32 %v1668_v32, %v1668_v32  ;;  %v2036_v31 = vld [vmem:[%s2874_s22 + $0x1] ss:$0 sm:$0xff] }
0x10cc   :  { %2093 = vtanh.f32 %v1678_v33  ;;  %v1673_v35 = vmul.f32 %v1671_v34, %v1668_v32 }
0x10ce   :  { %v1675_v36 = vmul.f32 0.044715, %v1673_v35 }
0x10d0   :  { %v1677_v37 = vadd.f32 %v1675_v36, %v1668_v32  ;;  %v1830_v36 = vld [vmem:[%s2878_s25 + $0x18] sm:$0xff] }
0x10d1   :  { %1850 = vmatpush.msra.mxu3 %v1830_v36 }
0x10d2   :  { %v2094_v38 = vpop.eup %2093  ;;  %v1679_v39 = vmul.f32 0.7978846, %v1677_v37  ;;  %v1829_v37 = vld [vmem:[%s2878_s25 + $0x10] sm:$0xff] }
0x10d3   :  { %v1682_v41 = vadd.f32 1.0, %v2094_v38  ;;  %v1828_v38 = vld [vmem:[%s2878_s25 + $0x8] sm:$0xff]  ;;  %1851 = vmatpush.msra.mxu3 %v1829_v37 }
0x10d4   :  { %2095 = vtanh.f32 %v1679_v39  ;;  %v1827_v39 = vld [vmem:[%s2878_s25] sm:$0xff] }
0x10d5   :  { %v1684_v42 = vmul.f32 0.5, %v1682_v41  ;;  %1852 = vmatpush.msra.mxu3 %v1828_v38  ;;  %v2037_v41 = vld [vmem:[%s2875_s24] ss:$0 sm:$0xff] }
0x10d7   :  { %v1686_v4 = vmul.f32 %v1684_v42, %v1665_v25  ;;  %1853 = vmatpush.msra.mxu3 %v1827_v39 }
0x10d9   :  { %1998 = vmatmul.msk.f32.vlgmr.msrb.gmra.mxu1 %vm912_vm6, %v1686_v4 }
0x10da   :  { %v2096_v43 = vpop.eup %2095 }
0x10db   :  { %v1683_v44 = vadd.f32 1.0, %v2096_v43 }
0x10dd   :  { %v1685_v45 = vmul.f32 0.5, %v1683_v44  ;;  %v2038_v44 = vld [vmem:[%s2877_s26] ss:$0 sm:$0xff] }
0x10df   :  { %v1687_v46 = vmul.f32 %v1685_v45, %v1668_v32 }
0x10e1   :  { %1999 = vmatmul.msk.f32.gmra.mxu1 %vm912_vm6, %v1687_v46 }
0x1156   :  { %v1725_v47 = vpop.f32.mrf.mxu1 }
0x1157   :  { %v1726_v48 = vadd.f32 %v2034_v8, %v1725_v47 }
0x1159   :  { %v1731_v49 = vadd.f32 %v1726_v48, %v1629_v26 }
0x115b   :  { %v1737_v50 = vsel %vm150_vm2, %v1731_v49, 0.0 }
0x115c   :  { %1738 = vadd.xlane.f32.xlu1 %v1737_v50 }
0x115e   :  { %v1728_v51 = vpop.f32.mrf.mxu1 }
0x115f   :  { %v1729_v52 = vadd.f32 %v2034_v8, %v1728_v51 }
0x1161   :  { %v1732_v54 = vadd.f32 %v1729_v52, %v1630_v13 }
0x1163   :  { %v1740_v55 = vsel %vm150_vm2, %v1732_v54, 0.0 }
0x1164   :  { %1741 = vadd.xlane.f32.xlu0 %v1740_v55 }
0x11cf   :  { %v1739_v53 = vpop.xlane.xlu1 %1738 }
0x11d0   :  { %v1743_v56 = vmul.f32 %v1739_v53, %v2308_v40 }
0x11d2   :  { %v1745_v57 = vsub.f32 %v1731_v49, %v1743_v56 }
0x11d4   :  { %v1747_v58 = vmul.f32 %v1745_v57, %v1745_v57 }
0x11d6   :  { %v1749_v59 = vsel %vm150_vm2, %v1747_v58, 0.0 }
0x11d7   :  { %1750 = vadd.xlane.f32.xlu0 %v1749_v59  ;;  %v1742_v60 = vpop.xlane.xlu0 %1741 }
0x11d8   :  { %v1744_v61 = vmul.f32 %v1742_v60, %v2308_v40 }
0x11da   :  { %v1746_v62 = vsub.f32 %v1732_v54, %v1744_v61 }
0x11dc   :  { %v1748_v63 = vmul.f32 %v1746_v62, %v1746_v62 }
0x11de   :  { %v1752_v0 = vsel %vm150_vm2, %v1748_v63, 0.0 }
0x11df   :  { %1753 = vadd.xlane.f32.xlu2 %v1752_v0 }
0x124a   :  { %v1751_v1 = vpop.xlane.xlu0 %1750 }
0x124b   :  { %v1755_v2 = vmul.f32 %v1751_v1, %v2308_v40 }
0x124d   :  { %v1757_v5 = vadd.f32 1e-12, %v1755_v2 }
0x124f   :  { %2097 = vrsqrt.f32 %v1757_v5  ;;  %vm1765_vm9 = vweird.f32 %v1757_v5 }
0x1252   :  { %v1754_v26 = vpop.xlane.xlu2 %1753 }
0x1253   :  { %v1756_v9 = vmul.f32 %v1754_v26, %v2308_v40  ;;  %v2035_v40 = vld [vmem:[%s2873_s21 + $0x1] ss:$0 sm:$0xff] }
0x1255   :  { %v2098_v10 = vpop.eup %2097  ;;  %v1758_v11 = vadd.f32 1e-12, %v1756_v9 }
0x1256   :  { %v1760_v12 = vmul.f32 %v2098_v10, %v1757_v5  ;;  %vm1766_vm6 = vweird.f32 %v2098_v10 }
0x1257   :  { %2099 = vrsqrt.f32 %v1758_v11  ;;  %vm1767_vm12 = vmor %vm1765_vm9, %vm1766_vm6  ;;  %vm1775_vm14 = vweird.f32 %v1758_v11 }
0x1258   :  { %v1761_v13 = vmul.f32 %v2098_v10, %v1760_v12 }
0x125a   :  { %v1762_v14 = vmul.f32 0.5, %v1761_v13 }
0x125c   :  { %v1763_v15 = vsub.f32 1.5, %v1762_v14 }
0x125d   :  { %v2100_v16 = vpop.eup %2099 }
0x125e   :  { %v1770_v17 = vmul.f32 %v2100_v16, %v1758_v11  ;;  %v1764_v18 = vmul.f32 %v2098_v10, %v1763_v15  ;;  %vm1776_vm13 = vweird.f32 %v2100_v16 }
0x125f   :  { %vm1777_vm15 = vmor %vm1775_vm14, %vm1776_vm13 }
0x1260   :  { %v1771_v19 = vmul.f32 %v2100_v16, %v1770_v17  ;;  %v1768_v22 = vsel %vm1767_vm12, %v2098_v10, %v1764_v18 }
0x1261   :  { %v1779_v25 = vmul.f32 %v1768_v22, %v1745_v57 }
0x1262   :  { %v1772_v20 = vmul.f32 0.5, %v1771_v19 }
0x1263   :  { %v1784_v29 = vmul.f32 %v2035_v40, %v1779_v25 }
0x1264   :  { %v1773_v23 = vsub.f32 1.5, %v1772_v20 }
0x1265   :  { %v1789_v33 = vadd.f32 %v2036_v31, %v1784_v29 }
0x1266   :  { %v1774_v24 = vmul.f32 %v2100_v16, %v1773_v23 }
0x1268   :  { %v1778_v27 = vsel %vm1777_vm15, %v2100_v16, %v1774_v24 }
0x1269   :  { %v1780_v28 = vmul.f32 %v1778_v27, %v1746_v62 }
0x126b   :  { %v1785_v30 = vmul.f32 %v2035_v40, %v1780_v28 }
0x126d   :  { %v1790_v32 = vadd.f32 %v2036_v31, %v1785_v30 }
0x126f   :  { %v1801_v34 = vrot.slane %v1790_v32, 7 }
0x1271   :  { %v1803_v35 = vsel %vm1802_vm0, %v1801_v34, %v1789_v33 }
0x1272   :  { %2002 = vmatmul.msk.f32.vlgmr.msrb.gmra.mxu2 %vm150_vm2, %v1803_v35 }
0x12f5   :  { %v1823_v42 = vpop.f32.mrf.mxu2 }
0x12f6   :  { %v1824_v4 = vadd.f32 %v2037_v41, %v1823_v42 }
0x12f8   :  { %2101 = vtanh.f32 %v1824_v4 }
0x12fe   :  { %v2102_v43 = vpop.eup %2101 }
0x12ff   :  { %2003 = vmatmul.msk.f32.vlgmr.msra.gmra.mxu3 %vm150_vm2, %v2102_v43 }
0x1382   :  { %v1855_v45 = vpop.f32.mrf.mxu3 }
0x1383   :  { %v1856_v46 = vadd.f32 %v2038_v44, %v1855_v45 }
0x1385   :  { %1859 = vst.msk [vmem:[%s2879_s27] sm:$0x3] %vm1858_vm1, %v1856_v46 }

</bundles_post_ra>
